<compile_context>
chip_gen: v5e
topology: v5e:2x2
jax: 0.10.0
libtpu: 0.0.40
codegen_flags: <defaults>
</compile_context>

<pallas_src>
import functools

import jax
import jax.numpy as jnp
from jax import lax
from jax.experimental import pallas as pl
from jax.experimental.pallas import tpu as pltpu

FACE_STRIDE = 24    # scalars per face in the flat SMEM face table (21 used + 3 pad)
TILE_H = 16         # image rows per grid step
PARAM_LEN = 32      # scalars in the light/camera parameter vector
ZNEAR = 1e-3
BIG_Z = 1e10


# -----------------------------------------------------------------------------
# Kernel: z-buffer rasterization over the per-stripe face list + deferred
# SoftPhong shading.  Grid iterates over TILE_H-row image stripes; per stripe
# we loop over only the faces whose bbox overlaps the stripe, evaluate the
# precomputed affine barycentric coefficients for every pixel of the
# (tile_h, W) tile, keep the nearest fragment's interpolated attributes, then
# shade once per pixel in the epilogue.
# -----------------------------------------------------------------------------
def _make_raster_shade_kernel(faces_per_stripe):
    def kernel(counts_ref, flist_ref, face_ref, par_ref, out_ref):
        _, tile_h, W = out_ref.shape
        stripe = pl.program_id(0)

        row0 = (stripe * tile_h).astype(jnp.float32)
        ys = lax.broadcasted_iota(jnp.int32, (tile_h, W), 0).astype(jnp.float32) + row0 + 0.5
        xs = lax.broadcasted_iota(jnp.int32, (tile_h, W), 1).astype(jnp.float32) + 0.5

        zeros = jnp.zeros((tile_h, W), jnp.float32)
        big = jnp.float32(BIG_Z)
        znear = jnp.float32(ZNEAR)

        nf = counts_ref[stripe]                 # faces overlapping this stripe
        list_base = stripe * faces_per_stripe

        def body(j, carry):
            best_z, nx, ny, nz, tr, tg, tb = carry
            f = flist_ref[list_base + j]
            base = f * FACE_STRIDE

            # affine barycentrics: lam_k = A_k*x + B_k*y + C_k (1/area pre-folded)
            A0 = face_ref[base + 0]; B0 = face_ref[base + 1]; C0 = face_ref[base + 2]
            A1 = face_ref[base + 3]; B1 = face_ref[base + 4]; C1 = face_ref[base + 5]
            lam0 = A0 * xs + B0 * ys + C0
            lam1 = A1 * xs + B1 * ys + C1
            lam2 = 1.0 - lam0 - lam1

            # TODO(synk): linear (not perspective-correct) barycentric interpolation.
            zi = face_ref[base + 8] + lam0 * face_ref[base + 6] + lam1 * face_ref[base + 7]

            inside = (lam0 >= 0.0) & (lam1 >= 0.0) & (lam2 >= 0.0)
            valid = inside & (zi > znear) & (zi < best_z)

            def interp(o):
                return (face_ref[base + o + 2]
                        + lam0 * face_ref[base + o]
                        + lam1 * face_ref[base + o + 1])

            tr_n = interp(12); tg_n = interp(15); tb_n = interp(18)
            fnx = face_ref[base + 9]; fny = face_ref[base + 10]; fnz = face_ref[base + 11]

            best_z = jnp.where(valid, zi, best_z)
            nx = jnp.where(valid, fnx, nx)
            ny = jnp.where(valid, fny, ny)
            nz = jnp.where(valid, fnz, nz)
            tr = jnp.where(valid, tr_n, tr)
            tg = jnp.where(valid, tg_n, tg)
            tb = jnp.where(valid, tb_n, tb)
            return best_z, nx, ny, nz, tr, tg, tb

        init = (jnp.full((tile_h, W), big, jnp.float32),) + (zeros,) * 6
        best_z, nx, ny, nz, tr, tg, tb = lax.fori_loop(0, nf, body, init)

        # ---------------- deferred Phong shading (once per pixel) ----------------
        lpx, lpy, lpz = par_ref[0], par_ref[1], par_ref[2]      # point light (world)
        cpx, cpy, cpz = par_ref[3], par_ref[4], par_ref[5]      # camera center (world)
        amb = (par_ref[6], par_ref[7], par_ref[8])
        dif = (par_ref[9], par_ref[10], par_ref[11])
        spc = (par_ref[12], par_ref[13], par_ref[14])
        shin = par_ref[15]
        inv_fx, inv_fy = par_ref[16], par_ref[17]
        cx, cy = par_ref[18], par_ref[19]
        r00, r01, r02 = par_ref[20], par_ref[21], par_ref[22]
        r10, r11, r12 = par_ref[23], par_ref[24], par_ref[25]
        r20, r21, r22 = par_ref[26], par_ref[27], par_ref[28]

        mask = best_z < big * 0.5
        zs = jnp.where(mask, best_z, 1.0)

        # World position reconstructed from pixel coords + depth (inverse pinhole +
        # inverse extrinsics) instead of interpolating it per face in the loop.
        xc = (xs - cx) * inv_fx * zs
        yc = (ys - cy) * inv_fy * zs
        px = xc * r00 + yc * r01 + zs * r02 + cpx
        py = xc * r10 + yc * r11 + zs * r12 + cpy
        pz = xc * r20 + yc * r21 + zs * r22 + cpz

        inv_nlen = lax.rsqrt(nx * nx + ny * ny + nz * nz + 1e-12)
        nxn, nyn, nzn = nx * inv_nlen, ny * inv_nlen, nz * inv_nlen

        lx, ly, lz = lpx - px, lpy - py, lpz - pz
        inv_llen = lax.rsqrt(lx * lx + ly * ly + lz * lz + 1e-12)
        lx, ly, lz = lx * inv_llen, ly * inv_llen, lz * inv_llen

        vx, vy, vz = cpx - px, cpy - py, cpz - pz
        inv_vlen = lax.rsqrt(vx * vx + vy * vy + vz * vz + 1e-12)
        vx, vy, vz = vx * inv_vlen, vy * inv_vlen, vz * inv_vlen

        ndl = nxn * lx + nyn * ly + nzn * lz
        diff_t = jnp.maximum(ndl, 0.0)

        # Phong specular: reflect L about N, dot with view dir, raise to shininess.
        rx = 2.0 * ndl * nxn - lx
        ry = 2.0 * ndl * nyn - ly
        rz = 2.0 * ndl * nzn - lz
        rdv = jnp.maximum(rx * vx + ry * vy + rz * vz, 0.0)
        spec_t = jnp.where((ndl > 0.0) & (rdv > 0.0),
                           jnp.exp(shin * jnp.log(jnp.maximum(rdv, 1e-12))),
                           0.0)

        sh_r = tr * (amb[0] + dif[0] * diff_t) + spc[0] * spec_t
        sh_g = tg * (amb[1] + dif[1] * diff_t) + spc[1] * spec_t
        sh_b = tb * (amb[2] + dif[2] * diff_t) + spc[2] * spec_t

        # TODO(synk): SoftPhongShader's softmax blending approximated by hard
        # blending (faces_per_pixel=1, blur_radius=0, black background).
        alpha = mask.astype(jnp.float32)
        r = jnp.where(mask, sh_r, 0.0)
        g = jnp.where(mask, sh_g, 0.0)
        b = jnp.where(mask, sh_b, 0.0)
        z_out = jnp.where(mask, best_z, -1.0)

        # single lane-dense epilogue store: planes [r, g, b, a, z, pad, pad, pad]
        out_ref[...] = jnp.stack([r, g, b, alpha, z_out, zeros, zeros, zeros], axis=0)

    return kernel


def _rasterize_and_shade(counts, flist, face_attrs, params, H, W,
                         faces_per_stripe, tile_h=TILE_H):
    assert H % tile_h == 0 and W % 128 == 0
    # TODO(synk): for production SMPL face counts (~13.8k) stream face chunks
    # from HBM instead of a single flat SMEM table.
    kernel = _make_raster_shade_kernel(faces_per_stripe)
    return pl.pallas_call(
        kernel,
        out_shape=jax.ShapeDtypeStruct((8, H, W), jnp.float32),
        grid_spec=pltpu.PrefetchScalarGridSpec(
            num_scalar_prefetch=0,
            grid=(H // tile_h,),
            in_specs=[
                pl.BlockSpec(memory_space=pltpu.MemorySpace.SMEM),  # counts   (n_stripes,)
                pl.BlockSpec(memory_space=pltpu.MemorySpace.SMEM),  # face list(n_stripes*F,)
                pl.BlockSpec(memory_space=pltpu.MemorySpace.SMEM),  # face table (F*24,)
                pl.BlockSpec(memory_space=pltpu.MemorySpace.SMEM),  # params (32,)
            ],
            out_specs=pl.BlockSpec((8, tile_h, W), lambda i: (0, i, 0)),
        ),
        compiler_params=pltpu.CompilerParams(dimension_semantics=("parallel",)),
    )(counts, flist, face_attrs, params)


# -----------------------------------------------------------------------------
# Jitted forward glue: projection, texture gather, face-table + bucketing
# precompute, then the Pallas kernel.
# -----------------------------------------------------------------------------
@functools.partial(jax.jit, static_argnames=("H", "W", "normalize"))
def _forward_impl(verts, texture, R, T, K, uv_px, tri, *, H, W, normalize):
    verts = verts.astype(jnp.float32)
    texture = texture.astype(jnp.float32)
    if normalize:
        texture = texture / 255.0
    R = R.reshape(3, 3).astype(jnp.float32)
    T = T.reshape(3).astype(jnp.float32)
    K = K.astype(jnp.float32)

    # module negates the focal length (set_pytorch3d_camera_object)
    fx, fy = -K[0, 0], -K[1, 1]
    cx, cy = K[0, 2], K[1, 2]

    # --- vertex transform + pinhole projection (PyTorch3D row-vector conv.) ---
    # TODO(synk): plain pinhole projection approximates PyTorch3D's screen-space
    # camera convention (+X left, +Y up, NDC flip); no near-plane face clipping.
    Xc = verts @ R + T[None, :]                      # (V, 3) camera space
    zc = Xc[:, 2]
    zc_safe = jnp.where(jnp.abs(zc) < 1e-6,
                        jnp.where(zc < 0, -1e-6, 1e-6), zc)
    xp = fx * Xc[:, 0] / zc_safe + cx
    yp = fy * Xc[:, 1] / zc_safe + cy

    # --- per-vertex texture colour --------------------------------------------
    # TODO(synk): TexturesUV samples the texture per *pixel* with bilinear UV
    # interpolation; here colours are nearest texels per vertex, barycentrically
    # interpolated (and flat per-face normals).
    ux, uy = uv_px[:, 0], uv_px[:, 1]
    vert_colors = texture[uy, ux, :]                 # (V, 3)

    # --- per-face edge coefficients + attribute deltas -------------------------
    x = xp[tri]; y = yp[tri]; z = zc[tri]            # (F, 3)
    x0, x1, x2 = x[:, 0], x[:, 1], x[:, 2]
    y0, y1, y2 = y[:, 0], y[:, 1], y[:, 2]
    z0, z1, z2 = z[:, 0], z[:, 1], z[:, 2]

    area = (x1 - x0) * (y2 - y0) - (y1 - y0) * (x2 - x0)
    degen = jnp.abs(area) < 1e-8
    inv_area = jnp.where(degen, 0.0, 1.0 / jnp.where(degen, 1.0, area))
    A0 = (y1 - y2) * inv_area
    B0 = (x2 - x1) * inv_area
    C0 = (x1 * y2 - x2 * y1) * inv_area
    A1 = (y2 - y0) * inv_area
    B1 = (x0 - x2) * inv_area
    C1 = (x2 * y0 - x0 * y2) * inv_area

    v_wld = verts[tri]                               # (F, 3, 3)
    e1 = v_wld[:, 1] - v_wld[:, 0]
    e2 = v_wld[:, 2] - v_wld[:, 0]
    n = jnp.cross(e1, e2)
    n = n / (jnp.linalg.norm(n, axis=-1, keepdims=True) + 1e-12)

    v_col = vert_colors[tri]                         # (F, 3, 3)
    cr = v_col[..., 0]; cg = v_col[..., 1]; cb = v_col[..., 2]

    zeros_f = jnp.zeros_like(area)
    cols = [A0, B0, C0, A1, B1, C1,
            z0 - z2, z1 - z2, z2,
            n[:, 0], n[:, 1], n[:, 2],
            cr[:, 0] - cr[:, 2], cr[:, 1] - cr[:, 2], cr[:, 2],
            cg[:, 0] - cg[:, 2], cg[:, 1] - cg[:, 2], cg[:, 2],
            cb[:, 0] - cb[:, 2], cb[:, 1] - cb[:, 2], cb[:, 2],
            zeros_f, zeros_f, zeros_f]               # pad to FACE_STRIDE
    face_attrs = jnp.stack(cols, axis=-1).astype(jnp.float32).reshape(-1)

    # --- per-stripe face bucketing (bbox culling, same inside-test as kernel) --
    F = tri.shape[0]
    n_stripes = H // TILE_H
    xmin = jnp.min(x, axis=1); xmax = jnp.max(x, axis=1)
    ymin = jnp.min(y, axis=1); ymax = jnp.max(y, axis=1)
    zmax = jnp.max(z, axis=1)
    keep = (~degen) & (zmax > ZNEAR) & (xmax >= 0.5) & (xmin <= W - 0.5)
    s_lo = jnp.arange(n_stripes, dtype=jnp.float32)[:, None] * TILE_H
    overlap = (keep[None, :]
               & (ymax[None, :] >= s_lo + 0.5)
               & (ymin[None, :] <= s_lo + (TILE_H - 0.5)))          # (S, F)
    counts = jnp.sum(overlap, axis=1).astype(jnp.int32)             # (S,)
    # stable argsort: overlapping faces first, original face order preserved
    order = jnp.argsort(jnp.where(overlap, 0, 1), axis=1)
    flist = order.astype(jnp.int32).reshape(-1)                     # (S*F,)

    # --- lights / camera parameter vector --------------------------------------
    light_pos = -(R.T @ T)        # create_camera_light: -R^T T (point light position)
    cam_center = -(R @ T)         # PyTorch3D get_camera_center: -T R^T (view point)
    ambient = jnp.array([0.5, 0.5, 0.5], jnp.float32)   # PointLights defaults
    diffuse = jnp.array([0.3, 0.3, 0.3], jnp.float32)
    specular = jnp.array([0.2, 0.2, 0.2], jnp.float32)
    scalars = jnp.stack([jnp.float32(64.0),              # Materials default shininess
                         1.0 / fx, 1.0 / fy, cx, cy]).astype(jnp.float32)
    params = jnp.concatenate([
        light_pos, cam_center, ambient, diffuse, specular, scalars,
        R.reshape(-1), jnp.zeros((PARAM_LEN - 29,), jnp.float32),
    ]).astype(jnp.float32)

    slab = _rasterize_and_shade(counts, flist, face_attrs, params, H, W, F)

    images = jnp.transpose(slab[:4], (1, 2, 0))[None]   # (1, H, W, 4)
    zbuf = slab[4][None, :, :, None]                     # (1, H, W, 1)
    return images, zbuf


# -----------------------------------------------------------------------------
# Python wrapper mirroring Pytorch3D_Renderer
# -----------------------------------------------------------------------------
class PallasPytorch3DRenderer:
    def __init__(self, rendering_image_size, R, T, K, texture_map_size,
                 uv_coords=None, faces=None, num_verts=64, num_faces=32):
        # TODO(synk): the original module loads SMPL UVs / faces from
        # 'third_parties/smpl/models/smpl_uv.obj'; synthesize them here instead.
        self.image_size = rendering_image_size
        self.R_init = jnp.asarray(R, jnp.float32)
        self.T_init = jnp.asarray(T, jnp.float32)
        self.K = jnp.asarray(K, jnp.float32)
        self.texture_map_size = int(texture_map_size)

        if uv_coords is None:
            uv_coords = jax.random.uniform(jax.random.PRNGKey(1), (num_verts, 2))
        if faces is None:
            faces = jax.random.randint(jax.random.PRNGKey(2), (num_faces, 3), 0, num_verts)

        # load_uv semantics: uv in [0,1] -> integer texel coords, flip v axis.
        S = self.texture_map_size
        uv_px = jnp.floor(jnp.asarray(uv_coords, jnp.float32) * (S - 1)).astype(jnp.int32)
        uv_px = uv_px.at[:, 1].set(S - 1 - uv_px[:, 1])
        self.uv_coords = uv_px                             # (V, 2) texel coords (x, y)
        self.smpl_faces = jnp.asarray(faces, jnp.int32)    # (F, 3)

    def forward(self, verts, texture, R, T, normalize_texture_tensor=False):
        verts = jnp.asarray(verts, jnp.float32)
        if verts.ndim == 3:
            verts = verts[0]
        texture = jnp.asarray(texture, jnp.float32)
        if texture.ndim == 4:
            texture = texture[0]
        R = jnp.asarray(R, jnp.float32)
        T = jnp.asarray(T, jnp.float32)
        H, W = self.image_size
        return _forward_impl(verts, texture, R, T, self.K, self.uv_coords,
                             self.smpl_faces, H=H, W=W,
                             normalize=bool(normalize_texture_tensor))

    __call__ = forward


if __name__ == "__main__":
    H, W = 64, 128          # rendering image size (small, lane-dense width)
    Ht = Wt = 16            # texture map size
    V, F = 64, 32           # synthetic mesh size

    key = jax.random.PRNGKey(0)
    k1, k2, k3, k4 = jax.random.split(key, 4)
    verts = jax.random.uniform(k1, (V, 3), minval=-0.5, maxval=0.5)
    faces = jax.random.randint(k2, (F, 3), 0, V)
    texture = jax.random.uniform(k3, (Ht, Wt, 3))
    uv_coords = jax.random.uniform(k4, (V, 2))

    R = jnp.eye(3, dtype=jnp.float32)
    T = jnp.array([0.0, 0.0, 3.0], jnp.float32)
    K = jnp.array([[100.0, 0.0, W / 2.0],
                   [0.0, 100.0, H / 2.0],
                   [0.0, 0.0, 1.0]], jnp.float32)

    renderer = PallasPytorch3DRenderer((H, W), R, T, K, texture_map_size=Ht,
                                       uv_coords=uv_coords, faces=faces)
    images, zbuf = renderer.forward(verts, texture, R, T,
                                    normalize_texture_tensor=False)
    jax.block_until_ready(images)
    jax.block_until_ready(zbuf)
    assert images.shape == (1, H, W, 4) and zbuf.shape == (1, H, W, 1)
    assert bool(jnp.isfinite(images).all()) and bool(jnp.isfinite(zbuf).all())
    print("KERNEL_OK")
</pallas_src>

<mosaic_0001>
module attributes {stable_mosaic.version = 11 : i64} {
  func.func @kernel(%arg0: i32, %arg1: memref<4xi32, #tpu.memory_space<smem>>, %arg2: memref<128xi32, #tpu.memory_space<smem>>, %arg3: memref<768xf32, #tpu.memory_space<smem>>, %arg4: memref<32xf32, #tpu.memory_space<smem>>, %arg5: memref<8x16x128xf32, #tpu.memory_space<vmem>>) attributes {dimension_semantics = [#tpu.dimension_semantics<parallel>], iteration_bounds = array<i64: 4>, scalar_prefetch = 0 : i64, scratch_operands = 0 : i64, tpu.core_type = #tpu.core_type<tc>, window_params = [{transform_indices = @transform_0, window_bounds = array<i64: 4>}, {transform_indices = @transform_1, window_bounds = array<i64: 128>}, {transform_indices = @transform_2, window_bounds = array<i64: 768>}, {transform_indices = @transform_3, window_bounds = array<i64: 32>}, {transform_indices = @transform_4, window_bounds = array<i64: 8, 16, 128>}]} {
    %c16_i32 = arith.constant 16 : i32
    %0 = arith.muli %arg0, %c16_i32 : i32
    %1 = arith.sitofp %0 : i32 to f32
    %2 = tpu.iota {dimensions = array<i32: 0>} : vector<16x128xi32>
    %3 = arith.sitofp %2 : vector<16x128xi32> to vector<16x128xf32>
    %4 = vector.broadcast %1 : f32 to vector<16x128xf32>
    %5 = arith.addf %3, %4 : vector<16x128xf32>
    %cst = arith.constant 5.000000e-01 : f32
    %6 = vector.broadcast %cst : f32 to vector<16x128xf32>
    %7 = arith.addf %5, %6 : vector<16x128xf32>
    %8 = tpu.iota {dimensions = array<i32: 1>} : vector<16x128xi32>
    %9 = arith.sitofp %8 : vector<16x128xi32> to vector<16x128xf32>
    %cst_0 = arith.constant 5.000000e-01 : f32
    %10 = vector.broadcast %cst_0 : f32 to vector<16x128xf32>
    %11 = arith.addf %9, %10 : vector<16x128xf32>
    %cst_1 = arith.constant 0.000000e+00 : f32
    %12 = vector.broadcast %cst_1 : f32 to vector<16x128xf32>
    %13 = arith.index_cast %arg0 : i32 to index
    %14 = memref.load %arg1[%13] : memref<4xi32, #tpu.memory_space<smem>>
    %c32_i32 = arith.constant 32 : i32
    %15 = arith.muli %arg0, %c32_i32 : i32
    %cst_2 = arith.constant 1.000000e+10 : f32
    %16 = vector.broadcast %cst_2 : f32 to vector<16x128xf32>
    %cst_3 = arith.constant 1.000000e-03 : f32
    %c0_i32 = arith.constant 0 : i32
    %17 = arith.subi %14, %c0_i32 : i32
    %18 = arith.addi %c0_i32, %17 : i32
    %c1_i32 = arith.constant 1 : i32
    %19:7 = scf.for %arg6 = %c0_i32 to %18 step %c1_i32 iter_args(%arg7 = %16, %arg8 = %12, %arg9 = %12, %arg10 = %12, %arg11 = %12, %arg12 = %12, %arg13 = %12) -> (vector<16x128xf32>, vector<16x128xf32>, vector<16x128xf32>, vector<16x128xf32>, vector<16x128xf32>, vector<16x128xf32>, vector<16x128xf32>)  : i32 {
      %222 = arith.addi %15, %arg6 : i32
      %223 = arith.index_cast %222 : i32 to index
      %224 = memref.load %arg2[%223] : memref<128xi32, #tpu.memory_space<smem>>
      %c24_i32 = arith.constant 24 : i32
      %225 = arith.muli %224, %c24_i32 : i32
      %c0_i32_26 = arith.constant 0 : i32
      %226 = arith.addi %225, %c0_i32_26 : i32
      %227 = arith.index_cast %226 : i32 to index
      %228 = memref.load %arg3[%227] : memref<768xf32, #tpu.memory_space<smem>>
      %c1_i32_27 = arith.constant 1 : i32
      %229 = arith.addi %225, %c1_i32_27 : i32
      %230 = arith.index_cast %229 : i32 to index
      %231 = memref.load %arg3[%230] : memref<768xf32, #tpu.memory_space<smem>>
      %c2_i32 = arith.constant 2 : i32
      %232 = arith.addi %225, %c2_i32 : i32
      %233 = arith.index_cast %232 : i32 to index
      %234 = memref.load %arg3[%233] : memref<768xf32, #tpu.memory_space<smem>>
      %c3_i32 = arith.constant 3 : i32
      %235 = arith.addi %225, %c3_i32 : i32
      %236 = arith.index_cast %235 : i32 to index
      %237 = memref.load %arg3[%236] : memref<768xf32, #tpu.memory_space<smem>>
      %c4_i32 = arith.constant 4 : i32
      %238 = arith.addi %225, %c4_i32 : i32
      %239 = arith.index_cast %238 : i32 to index
      %240 = memref.load %arg3[%239] : memref<768xf32, #tpu.memory_space<smem>>
      %c5_i32 = arith.constant 5 : i32
      %241 = arith.addi %225, %c5_i32 : i32
      %242 = arith.index_cast %241 : i32 to index
      %243 = memref.load %arg3[%242] : memref<768xf32, #tpu.memory_space<smem>>
      %244 = vector.broadcast %228 : f32 to vector<16x128xf32>
      %245 = arith.mulf %244, %11 : vector<16x128xf32>
      %246 = vector.broadcast %231 : f32 to vector<16x128xf32>
      %247 = arith.mulf %246, %7 : vector<16x128xf32>
      %248 = arith.addf %245, %247 : vector<16x128xf32>
      %249 = vector.broadcast %234 : f32 to vector<16x128xf32>
      %250 = arith.addf %248, %249 : vector<16x128xf32>
      %251 = vector.broadcast %237 : f32 to vector<16x128xf32>
      %252 = arith.mulf %251, %11 : vector<16x128xf32>
      %253 = vector.broadcast %240 : f32 to vector<16x128xf32>
      %254 = arith.mulf %253, %7 : vector<16x128xf32>
      %255 = arith.addf %252, %254 : vector<16x128xf32>
      %256 = vector.broadcast %243 : f32 to vector<16x128xf32>
      %257 = arith.addf %255, %256 : vector<16x128xf32>
      %cst_28 = arith.constant 1.000000e+00 : f32
      %258 = vector.broadcast %cst_28 : f32 to vector<16x128xf32>
      %259 = arith.subf %258, %250 : vector<16x128xf32>
      %260 = arith.subf %259, %257 : vector<16x128xf32>
      %c8_i32 = arith.constant 8 : i32
      %261 = arith.addi %225, %c8_i32 : i32
      %262 = arith.index_cast %261 : i32 to index
      %263 = memref.load %arg3[%262] : memref<768xf32, #tpu.memory_space<smem>>
      %c6_i32 = arith.constant 6 : i32
      %264 = arith.addi %225, %c6_i32 : i32
      %265 = arith.index_cast %264 : i32 to index
      %266 = memref.load %arg3[%265] : memref<768xf32, #tpu.memory_space<smem>>
      %267 = vector.broadcast %266 : f32 to vector<16x128xf32>
      %268 = arith.mulf %250, %267 : vector<16x128xf32>
      %269 = vector.broadcast %263 : f32 to vector<16x128xf32>
      %270 = arith.addf %269, %268 : vector<16x128xf32>
      %c7_i32 = arith.constant 7 : i32
      %271 = arith.addi %225, %c7_i32 : i32
      %272 = arith.index_cast %271 : i32 to index
      %273 = memref.load %arg3[%272] : memref<768xf32, #tpu.memory_space<smem>>
      %274 = vector.broadcast %273 : f32 to vector<16x128xf32>
      %275 = arith.mulf %257, %274 : vector<16x128xf32>
      %276 = arith.addf %270, %275 : vector<16x128xf32>
      %cst_29 = arith.constant 0.000000e+00 : f32
      %277 = vector.broadcast %cst_29 : f32 to vector<16x128xf32>
      %278 = arith.cmpf oge, %250, %277 : vector<16x128xf32>
      %cst_30 = arith.constant 0.000000e+00 : f32
      %279 = vector.broadcast %cst_30 : f32 to vector<16x128xf32>
      %280 = arith.cmpf oge, %257, %279 : vector<16x128xf32>
      %281 = arith.andi %278, %280 : vector<16x128xi1>
      %cst_31 = arith.constant 0.000000e+00 : f32
      %282 = vector.broadcast %cst_31 : f32 to vector<16x128xf32>
      %283 = arith.cmpf oge, %260, %282 : vector<16x128xf32>
      %284 = arith.andi %281, %283 : vector<16x128xi1>
      %285 = vector.broadcast %cst_3 : f32 to vector<16x128xf32>
      %286 = arith.cmpf ogt, %276, %285 : vector<16x128xf32>
      %287 = arith.andi %284, %286 : vector<16x128xi1>
      %288 = arith.cmpf olt, %276, %arg7 : vector<16x128xf32>
      %289 = arith.andi %287, %288 : vector<16x128xi1>
      %c12_i32 = arith.constant 12 : i32
      %290 = arith.addi %225, %c12_i32 : i32
      %c2_i32_32 = arith.constant 2 : i32
      %291 = arith.addi %290, %c2_i32_32 : i32
      %292 = arith.index_cast %291 : i32 to index
      %293 = memref.load %arg3[%292] : memref<768xf32, #tpu.memory_space<smem>>
      %c12_i32_33 = arith.constant 12 : i32
      %294 = arith.addi %225, %c12_i32_33 : i32
      %295 = arith.index_cast %294 : i32 to index
      %296 = memref.load %arg3[%295] : memref<768xf32, #tpu.memory_space<smem>>
      %297 = vector.broadcast %296 : f32 to vector<16x128xf32>
      %298 = arith.mulf %250, %297 : vector<16x128xf32>
      %299 = vector.broadcast %293 : f32 to vector<16x128xf32>
      %300 = arith.addf %299, %298 : vector<16x128xf32>
      %c12_i32_34 = arith.constant 12 : i32
      %301 = arith.addi %225, %c12_i32_34 : i32
      %c1_i32_35 = arith.constant 1 : i32
      %302 = arith.addi %301, %c1_i32_35 : i32
      %303 = arith.index_cast %302 : i32 to index
      %304 = memref.load %arg3[%303] : memref<768xf32, #tpu.memory_space<smem>>
      %305 = vector.broadcast %304 : f32 to vector<16x128xf32>
      %306 = arith.mulf %257, %305 : vector<16x128xf32>
      %307 = arith.addf %300, %306 : vector<16x128xf32>
      %c15_i32 = arith.constant 15 : i32
      %308 = arith.addi %225, %c15_i32 : i32
      %c2_i32_36 = arith.constant 2 : i32
      %309 = arith.addi %308, %c2_i32_36 : i32
      %310 = arith.index_cast %309 : i32 to index
      %311 = memref.load %arg3[%310] : memref<768xf32, #tpu.memory_space<smem>>
      %c15_i32_37 = arith.constant 15 : i32
      %312 = arith.addi %225, %c15_i32_37 : i32
      %313 = arith.index_cast %312 : i32 to index
      %314 = memref.load %arg3[%313] : memref<768xf32, #tpu.memory_space<smem>>
      %315 = vector.broadcast %314 : f32 to vector<16x128xf32>
      %316 = arith.mulf %250, %315 : vector<16x128xf32>
      %317 = vector.broadcast %311 : f32 to vector<16x128xf32>
      %318 = arith.addf %317, %316 : vector<16x128xf32>
      %c15_i32_38 = arith.constant 15 : i32
      %319 = arith.addi %225, %c15_i32_38 : i32
      %c1_i32_39 = arith.constant 1 : i32
      %320 = arith.addi %319, %c1_i32_39 : i32
      %321 = arith.index_cast %320 : i32 to index
      %322 = memref.load %arg3[%321] : memref<768xf32, #tpu.memory_space<smem>>
      %323 = vector.broadcast %322 : f32 to vector<16x128xf32>
      %324 = arith.mulf %257, %323 : vector<16x128xf32>
      %325 = arith.addf %318, %324 : vector<16x128xf32>
      %c18_i32 = arith.constant 18 : i32
      %326 = arith.addi %225, %c18_i32 : i32
      %c2_i32_40 = arith.constant 2 : i32
      %327 = arith.addi %326, %c2_i32_40 : i32
      %328 = arith.index_cast %327 : i32 to index
      %329 = memref.load %arg3[%328] : memref<768xf32, #tpu.memory_space<smem>>
      %c18_i32_41 = arith.constant 18 : i32
      %330 = arith.addi %225, %c18_i32_41 : i32
      %331 = arith.index_cast %330 : i32 to index
      %332 = memref.load %arg3[%331] : memref<768xf32, #tpu.memory_space<smem>>
      %333 = vector.broadcast %332 : f32 to vector<16x128xf32>
      %334 = arith.mulf %250, %333 : vector<16x128xf32>
      %335 = vector.broadcast %329 : f32 to vector<16x128xf32>
      %336 = arith.addf %335, %334 : vector<16x128xf32>
      %c18_i32_42 = arith.constant 18 : i32
      %337 = arith.addi %225, %c18_i32_42 : i32
      %c1_i32_43 = arith.constant 1 : i32
      %338 = arith.addi %337, %c1_i32_43 : i32
      %339 = arith.index_cast %338 : i32 to index
      %340 = memref.load %arg3[%339] : memref<768xf32, #tpu.memory_space<smem>>
      %341 = vector.broadcast %340 : f32 to vector<16x128xf32>
      %342 = arith.mulf %257, %341 : vector<16x128xf32>
      %343 = arith.addf %336, %342 : vector<16x128xf32>
      %c9_i32 = arith.constant 9 : i32
      %344 = arith.addi %225, %c9_i32 : i32
      %345 = arith.index_cast %344 : i32 to index
      %346 = memref.load %arg3[%345] : memref<768xf32, #tpu.memory_space<smem>>
      %c10_i32 = arith.constant 10 : i32
      %347 = arith.addi %225, %c10_i32 : i32
      %348 = arith.index_cast %347 : i32 to index
      %349 = memref.load %arg3[%348] : memref<768xf32, #tpu.memory_space<smem>>
      %c11_i32 = arith.constant 11 : i32
      %350 = arith.addi %225, %c11_i32 : i32
      %351 = arith.index_cast %350 : i32 to index
      %352 = memref.load %arg3[%351] : memref<768xf32, #tpu.memory_space<smem>>
      %353 = arith.select %289, %276, %arg7 : vector<16x128xi1>, vector<16x128xf32>
      %354 = vector.broadcast %346 : f32 to vector<16x128xf32>
      %355 = arith.select %289, %354, %arg8 : vector<16x128xi1>, vector<16x128xf32>
      %356 = vector.broadcast %349 : f32 to vector<16x128xf32>
      %357 = arith.select %289, %356, %arg9 : vector<16x128xi1>, vector<16x128xf32>
      %358 = vector.broadcast %352 : f32 to vector<16x128xf32>
      %359 = arith.select %289, %358, %arg10 : vector<16x128xi1>, vector<16x128xf32>
      %360 = arith.select %289, %307, %arg11 : vector<16x128xi1>, vector<16x128xf32>
      %361 = arith.select %289, %325, %arg12 : vector<16x128xi1>, vector<16x128xf32>
      %362 = arith.select %289, %343, %arg13 : vector<16x128xi1>, vector<16x128xf32>
      scf.yield %353, %355, %357, %359, %360, %361, %362 : vector<16x128xf32>, vector<16x128xf32>, vector<16x128xf32>, vector<16x128xf32>, vector<16x128xf32>, vector<16x128xf32>, vector<16x128xf32>
    }
    %c0 = arith.constant 0 : index
    %20 = memref.load %arg4[%c0] : memref<32xf32, #tpu.memory_space<smem>>
    %c1 = arith.constant 1 : index
    %21 = memref.load %arg4[%c1] : memref<32xf32, #tpu.memory_space<smem>>
    %c2 = arith.constant 2 : index
    %22 = memref.load %arg4[%c2] : memref<32xf32, #tpu.memory_space<smem>>
    %c3 = arith.constant 3 : index
    %23 = memref.load %arg4[%c3] : memref<32xf32, #tpu.memory_space<smem>>
    %c4 = arith.constant 4 : index
    %24 = memref.load %arg4[%c4] : memref<32xf32, #tpu.memory_space<smem>>
    %c5 = arith.constant 5 : index
    %25 = memref.load %arg4[%c5] : memref<32xf32, #tpu.memory_space<smem>>
    %c6 = arith.constant 6 : index
    %26 = memref.load %arg4[%c6] : memref<32xf32, #tpu.memory_space<smem>>
    %c7 = arith.constant 7 : index
    %27 = memref.load %arg4[%c7] : memref<32xf32, #tpu.memory_space<smem>>
    %c8 = arith.constant 8 : index
    %28 = memref.load %arg4[%c8] : memref<32xf32, #tpu.memory_space<smem>>
    %c9 = arith.constant 9 : index
    %29 = memref.load %arg4[%c9] : memref<32xf32, #tpu.memory_space<smem>>
    %c10 = arith.constant 10 : index
    %30 = memref.load %arg4[%c10] : memref<32xf32, #tpu.memory_space<smem>>
    %c11 = arith.constant 11 : index
    %31 = memref.load %arg4[%c11] : memref<32xf32, #tpu.memory_space<smem>>
    %c12 = arith.constant 12 : index
    %32 = memref.load %arg4[%c12] : memref<32xf32, #tpu.memory_space<smem>>
    %c13 = arith.constant 13 : index
    %33 = memref.load %arg4[%c13] : memref<32xf32, #tpu.memory_space<smem>>
    %c14 = arith.constant 14 : index
    %34 = memref.load %arg4[%c14] : memref<32xf32, #tpu.memory_space<smem>>
    %c15 = arith.constant 15 : index
    %35 = memref.load %arg4[%c15] : memref<32xf32, #tpu.memory_space<smem>>
    %c16 = arith.constant 16 : index
    %36 = memref.load %arg4[%c16] : memref<32xf32, #tpu.memory_space<smem>>
    %c17 = arith.constant 17 : index
    %37 = memref.load %arg4[%c17] : memref<32xf32, #tpu.memory_space<smem>>
    %c18 = arith.constant 18 : index
    %38 = memref.load %arg4[%c18] : memref<32xf32, #tpu.memory_space<smem>>
    %c19 = arith.constant 19 : index
    %39 = memref.load %arg4[%c19] : memref<32xf32, #tpu.memory_space<smem>>
    %c20 = arith.constant 20 : index
    %40 = memref.load %arg4[%c20] : memref<32xf32, #tpu.memory_space<smem>>
    %c21 = arith.constant 21 : index
    %41 = memref.load %arg4[%c21] : memref<32xf32, #tpu.memory_space<smem>>
    %c22 = arith.constant 22 : index
    %42 = memref.load %arg4[%c22] : memref<32xf32, #tpu.memory_space<smem>>
    %c23 = arith.constant 23 : index
    %43 = memref.load %arg4[%c23] : memref<32xf32, #tpu.memory_space<smem>>
    %c24 = arith.constant 24 : index
    %44 = memref.load %arg4[%c24] : memref<32xf32, #tpu.memory_space<smem>>
    %c25 = arith.constant 25 : index
    %45 = memref.load %arg4[%c25] : memref<32xf32, #tpu.memory_space<smem>>
    %c26 = arith.constant 26 : index
    %46 = memref.load %arg4[%c26] : memref<32xf32, #tpu.memory_space<smem>>
    %c27 = arith.constant 27 : index
    %47 = memref.load %arg4[%c27] : memref<32xf32, #tpu.memory_space<smem>>
    %c28 = arith.constant 28 : index
    %48 = memref.load %arg4[%c28] : memref<32xf32, #tpu.memory_space<smem>>
    %cst_4 = arith.constant 1.000000e+10 : f32
    %cst_5 = arith.constant 5.000000e-01 : f32
    %49 = arith.mulf %cst_4, %cst_5 : f32
    %50 = vector.broadcast %49 : f32 to vector<16x128xf32>
    %51 = arith.cmpf olt, %19#0, %50 : vector<16x128xf32>
    %cst_6 = arith.constant 1.000000e+00 : f32
    %52 = vector.broadcast %cst_6 : f32 to vector<16x128xf32>
    %53 = arith.select %51, %19#0, %52 : vector<16x128xi1>, vector<16x128xf32>
    %54 = vector.broadcast %38 : f32 to vector<16x128xf32>
    %55 = arith.subf %11, %54 : vector<16x128xf32>
    %56 = vector.broadcast %36 : f32 to vector<16x128xf32>
    %57 = arith.mulf %55, %56 : vector<16x128xf32>
    %58 = arith.mulf %57, %53 : vector<16x128xf32>
    %59 = vector.broadcast %39 : f32 to vector<16x128xf32>
    %60 = arith.subf %7, %59 : vector<16x128xf32>
    %61 = vector.broadcast %37 : f32 to vector<16x128xf32>
    %62 = arith.mulf %60, %61 : vector<16x128xf32>
    %63 = arith.mulf %62, %53 : vector<16x128xf32>
    %64 = vector.broadcast %40 : f32 to vector<16x128xf32>
    %65 = arith.mulf %58, %64 : vector<16x128xf32>
    %66 = vector.broadcast %41 : f32 to vector<16x128xf32>
    %67 = arith.mulf %63, %66 : vector<16x128xf32>
    %68 = arith.addf %65, %67 : vector<16x128xf32>
    %69 = vector.broadcast %42 : f32 to vector<16x128xf32>
    %70 = arith.mulf %53, %69 : vector<16x128xf32>
    %71 = arith.addf %68, %70 : vector<16x128xf32>
    %72 = vector.broadcast %23 : f32 to vector<16x128xf32>
    %73 = arith.addf %71, %72 : vector<16x128xf32>
    %74 = vector.broadcast %43 : f32 to vector<16x128xf32>
    %75 = arith.mulf %58, %74 : vector<16x128xf32>
    %76 = vector.broadcast %44 : f32 to vector<16x128xf32>
    %77 = arith.mulf %63, %76 : vector<16x128xf32>
    %78 = arith.addf %75, %77 : vector<16x128xf32>
    %79 = vector.broadcast %45 : f32 to vector<16x128xf32>
    %80 = arith.mulf %53, %79 : vector<16x128xf32>
    %81 = arith.addf %78, %80 : vector<16x128xf32>
    %82 = vector.broadcast %24 : f32 to vector<16x128xf32>
    %83 = arith.addf %81, %82 : vector<16x128xf32>
    %84 = vector.broadcast %46 : f32 to vector<16x128xf32>
    %85 = arith.mulf %58, %84 : vector<16x128xf32>
    %86 = vector.broadcast %47 : f32 to vector<16x128xf32>
    %87 = arith.mulf %63, %86 : vector<16x128xf32>
    %88 = arith.addf %85, %87 : vector<16x128xf32>
    %89 = vector.broadcast %48 : f32 to vector<16x128xf32>
    %90 = arith.mulf %53, %89 : vector<16x128xf32>
    %91 = arith.addf %88, %90 : vector<16x128xf32>
    %92 = vector.broadcast %25 : f32 to vector<16x128xf32>
    %93 = arith.addf %91, %92 : vector<16x128xf32>
    %94 = arith.mulf %19#1, %19#1 : vector<16x128xf32>
    %95 = arith.mulf %19#2, %19#2 : vector<16x128xf32>
    %96 = arith.addf %94, %95 : vector<16x128xf32>
    %97 = arith.mulf %19#3, %19#3 : vector<16x128xf32>
    %98 = arith.addf %96, %97 : vector<16x128xf32>
    %cst_7 = arith.constant 9.99999996E-13 : f32
    %99 = vector.broadcast %cst_7 : f32 to vector<16x128xf32>
    %100 = arith.addf %98, %99 : vector<16x128xf32>
    %101 = math.rsqrt %100 : vector<16x128xf32>
    %102 = arith.mulf %19#1, %101 : vector<16x128xf32>
    %103 = arith.mulf %19#2, %101 : vector<16x128xf32>
    %104 = arith.mulf %19#3, %101 : vector<16x128xf32>
    %105 = vector.broadcast %20 : f32 to vector<16x128xf32>
    %106 = arith.subf %105, %73 : vector<16x128xf32>
    %107 = vector.broadcast %21 : f32 to vector<16x128xf32>
    %108 = arith.subf %107, %83 : vector<16x128xf32>
    %109 = vector.broadcast %22 : f32 to vector<16x128xf32>
    %110 = arith.subf %109, %93 : vector<16x128xf32>
    %111 = arith.mulf %106, %106 : vector<16x128xf32>
    %112 = arith.mulf %108, %108 : vector<16x128xf32>
    %113 = arith.addf %111, %112 : vector<16x128xf32>
    %114 = arith.mulf %110, %110 : vector<16x128xf32>
    %115 = arith.addf %113, %114 : vector<16x128xf32>
    %cst_8 = arith.constant 9.99999996E-13 : f32
    %116 = vector.broadcast %cst_8 : f32 to vector<16x128xf32>
    %117 = arith.addf %115, %116 : vector<16x128xf32>
    %118 = math.rsqrt %117 : vector<16x128xf32>
    %119 = arith.mulf %106, %118 : vector<16x128xf32>
    %120 = arith.mulf %108, %118 : vector<16x128xf32>
    %121 = arith.mulf %110, %118 : vector<16x128xf32>
    %122 = vector.broadcast %23 : f32 to vector<16x128xf32>
    %123 = arith.subf %122, %73 : vector<16x128xf32>
    %124 = vector.broadcast %24 : f32 to vector<16x128xf32>
    %125 = arith.subf %124, %83 : vector<16x128xf32>
    %126 = vector.broadcast %25 : f32 to vector<16x128xf32>
    %127 = arith.subf %126, %93 : vector<16x128xf32>
    %128 = arith.mulf %123, %123 : vector<16x128xf32>
    %129 = arith.mulf %125, %125 : vector<16x128xf32>
    %130 = arith.addf %128, %129 : vector<16x128xf32>
    %131 = arith.mulf %127, %127 : vector<16x128xf32>
    %132 = arith.addf %130, %131 : vector<16x128xf32>
    %cst_9 = arith.constant 9.99999996E-13 : f32
    %133 = vector.broadcast %cst_9 : f32 to vector<16x128xf32>
    %134 = arith.addf %132, %133 : vector<16x128xf32>
    %135 = math.rsqrt %134 : vector<16x128xf32>
    %136 = arith.mulf %123, %135 : vector<16x128xf32>
    %137 = arith.mulf %125, %135 : vector<16x128xf32>
    %138 = arith.mulf %127, %135 : vector<16x128xf32>
    %139 = arith.mulf %102, %119 : vector<16x128xf32>
    %140 = arith.mulf %103, %120 : vector<16x128xf32>
    %141 = arith.addf %139, %140 : vector<16x128xf32>
    %142 = arith.mulf %104, %121 : vector<16x128xf32>
    %143 = arith.addf %141, %142 : vector<16x128xf32>
    %cst_10 = arith.constant 0.000000e+00 : f32
    %144 = vector.broadcast %cst_10 : f32 to vector<16x128xf32>
    %145 = arith.maximumf %143, %144 : vector<16x128xf32>
    %cst_11 = arith.constant 2.000000e+00 : f32
    %146 = vector.broadcast %cst_11 : f32 to vector<16x128xf32>
    %147 = arith.mulf %146, %143 : vector<16x128xf32>
    %148 = arith.mulf %147, %102 : vector<16x128xf32>
    %149 = arith.subf %148, %119 : vector<16x128xf32>
    %cst_12 = arith.constant 2.000000e+00 : f32
    %150 = vector.broadcast %cst_12 : f32 to vector<16x128xf32>
    %151 = arith.mulf %150, %143 : vector<16x128xf32>
    %152 = arith.mulf %151, %103 : vector<16x128xf32>
    %153 = arith.subf %152, %120 : vector<16x128xf32>
    %cst_13 = arith.constant 2.000000e+00 : f32
    %154 = vector.broadcast %cst_13 : f32 to vector<16x128xf32>
    %155 = arith.mulf %154, %143 : vector<16x128xf32>
    %156 = arith.mulf %155, %104 : vector<16x128xf32>
    %157 = arith.subf %156, %121 : vector<16x128xf32>
    %158 = arith.mulf %149, %136 : vector<16x128xf32>
    %159 = arith.mulf %153, %137 : vector<16x128xf32>
    %160 = arith.addf %158, %159 : vector<16x128xf32>
    %161 = arith.mulf %157, %138 : vector<16x128xf32>
    %162 = arith.addf %160, %161 : vector<16x128xf32>
    %cst_14 = arith.constant 0.000000e+00 : f32
    %163 = vector.broadcast %cst_14 : f32 to vector<16x128xf32>
    %164 = arith.maximumf %162, %163 : vector<16x128xf32>
    %cst_15 = arith.constant 0.000000e+00 : f32
    %165 = vector.broadcast %cst_15 : f32 to vector<16x128xf32>
    %166 = arith.cmpf ogt, %143, %165 : vector<16x128xf32>
    %cst_16 = arith.constant 0.000000e+00 : f32
    %167 = vector.broadcast %cst_16 : f32 to vector<16x128xf32>
    %168 = arith.cmpf ogt, %164, %167 : vector<16x128xf32>
    %169 = arith.andi %166, %168 : vector<16x128xi1>
    %cst_17 = arith.constant 9.99999996E-13 : f32
    %170 = vector.broadcast %cst_17 : f32 to vector<16x128xf32>
    %171 = arith.maximumf %164, %170 : vector<16x128xf32>
    %172 = math.log %171 : vector<16x128xf32>
    %173 = vector.broadcast %35 : f32 to vector<16x128xf32>
    %174 = arith.mulf %173, %172 : vector<16x128xf32>
    %175 = math.exp %174 : vector<16x128xf32>
    %cst_18 = arith.constant 0.000000e+00 : f32
    %176 = vector.broadcast %cst_18 : f32 to vector<16x128xf32>
    %177 = arith.select %169, %175, %176 : vector<16x128xi1>, vector<16x128xf32>
    %178 = vector.broadcast %29 : f32 to vector<16x128xf32>
    %179 = arith.mulf %178, %145 : vector<16x128xf32>
    %180 = vector.broadcast %26 : f32 to vector<16x128xf32>
    %181 = arith.addf %180, %179 : vector<16x128xf32>
    %182 = arith.mulf %19#4, %181 : vector<16x128xf32>
    %183 = vector.broadcast %32 : f32 to vector<16x128xf32>
    %184 = arith.mulf %183, %177 : vector<16x128xf32>
    %185 = arith.addf %182, %184 : vector<16x128xf32>
    %186 = vector.broadcast %30 : f32 to vector<16x128xf32>
    %187 = arith.mulf %186, %145 : vector<16x128xf32>
    %188 = vector.broadcast %27 : f32 to vector<16x128xf32>
    %189 = arith.addf %188, %187 : vector<16x128xf32>
    %190 = arith.mulf %19#5, %189 : vector<16x128xf32>
    %191 = vector.broadcast %33 : f32 to vector<16x128xf32>
    %192 = arith.mulf %191, %177 : vector<16x128xf32>
    %193 = arith.addf %190, %192 : vector<16x128xf32>
    %194 = vector.broadcast %31 : f32 to vector<16x128xf32>
    %195 = arith.mulf %194, %145 : vector<16x128xf32>
    %196 = vector.broadcast %28 : f32 to vector<16x128xf32>
    %197 = arith.addf %196, %195 : vector<16x128xf32>
    %198 = arith.mulf %19#6, %197 : vector<16x128xf32>
    %199 = vector.broadcast %34 : f32 to vector<16x128xf32>
    %200 = arith.mulf %199, %177 : vector<16x128xf32>
    %201 = arith.addf %198, %200 : vector<16x128xf32>
    %202 = arith.extui %51 : vector<16x128xi1> to vector<16x128xi32>
    %203 = arith.sitofp %202 : vector<16x128xi32> to vector<16x128xf32>
    %cst_19 = arith.constant 0.000000e+00 : f32
    %204 = vector.broadcast %cst_19 : f32 to vector<16x128xf32>
    %205 = arith.select %51, %185, %204 : vector<16x128xi1>, vector<16x128xf32>
    %cst_20 = arith.constant 0.000000e+00 : f32
    %206 = vector.broadcast %cst_20 : f32 to vector<16x128xf32>
    %207 = arith.select %51, %193, %206 : vector<16x128xi1>, vector<16x128xf32>
    %cst_21 = arith.constant 0.000000e+00 : f32
    %208 = vector.broadcast %cst_21 : f32 to vector<16x128xf32>
    %209 = arith.select %51, %201, %208 : vector<16x128xi1>, vector<16x128xf32>
    %cst_22 = arith.constant -1.000000e+00 : f32
    %210 = vector.broadcast %cst_22 : f32 to vector<16x128xf32>
    %211 = arith.select %51, %19#0, %210 : vector<16x128xi1>, vector<16x128xf32>
    %212 = vector.shape_cast %205 : vector<16x128xf32> to vector<1x16x128xf32>
    %213 = vector.shape_cast %207 : vector<16x128xf32> to vector<1x16x128xf32>
    %214 = vector.shape_cast %209 : vector<16x128xf32> to vector<1x16x128xf32>
    %215 = vector.shape_cast %203 : vector<16x128xf32> to vector<1x16x128xf32>
    %216 = vector.shape_cast %211 : vector<16x128xf32> to vector<1x16x128xf32>
    %217 = vector.shape_cast %12 : vector<16x128xf32> to vector<1x16x128xf32>
    %218 = vector.shape_cast %12 : vector<16x128xf32> to vector<1x16x128xf32>
    %219 = vector.shape_cast %12 : vector<16x128xf32> to vector<1x16x128xf32>
    %220 = tpu.concatenate %212, %213, %214, %215, %216, %217, %218, %219 in 0 : vector<1x16x128xf32>, vector<1x16x128xf32>, vector<1x16x128xf32>, vector<1x16x128xf32>, vector<1x16x128xf32>, vector<1x16x128xf32>, vector<1x16x128xf32>, vector<1x16x128xf32> -> vector<8x16x128xf32>
    %c0_23 = arith.constant 0 : index
    %c0_24 = arith.constant 0 : index
    %c0_25 = arith.constant 0 : index
    %221 = vector.load %arg5[%c0_23, %c0_24, %c0_25] : memref<8x16x128xf32, #tpu.memory_space<vmem>>, vector<8x16x128xf32>
    tpu.vector_store %arg5[%c0_23, %c0_24, %c0_25], %220 {strides = array<i32>} : memref<8x16x128xf32, #tpu.memory_space<vmem>>, vector<8x16x128xf32>,
    return
  }
  func.func @transform_0(%arg0: i32) -> i32 {
    %c0_i32 = arith.constant 0 : i32
    %c0_i32_0 = arith.constant 0 : i32
    return %c0_i32 : i32
  }
  func.func @transform_1(%arg0: i32) -> i32 {
    %c0_i32 = arith.constant 0 : i32
    %c0_i32_0 = arith.constant 0 : i32
    return %c0_i32 : i32
  }
  func.func @transform_2(%arg0: i32) -> i32 {
    %c0_i32 = arith.constant 0 : i32
    %c0_i32_0 = arith.constant 0 : i32
    return %c0_i32 : i32
  }
  func.func @transform_3(%arg0: i32) -> i32 {
    %c0_i32 = arith.constant 0 : i32
    %c0_i32_0 = arith.constant 0 : i32
    return %c0_i32 : i32
  }
  func.func @transform_4(%arg0: i32) -> (i32, i32, i32) {
    %c0_i32 = arith.constant 0 : i32
    %c0_i32_0 = arith.constant 0 : i32
    %c0_i32_1 = arith.constant 0 : i32
    return %c0_i32, %arg0, %c0_i32_0 : i32, i32, i32
  }
}

</mosaic_0001>

<bundles_post_ra>
// kernel: neg.7
= control target key start
LH: loop header
LB: loop body
LE: loop exit
PB: predicated region body
PF: predicated region fallthrough
CT: control target
= control target key end

     0   :  { %s24_s0 = inlined_call_operand.vmem [shape: f32[3], index: 0, kind: input, shape index: {}]   ;;  %s25_s1 = inlined_call_operand.vmem [shape: f32[3], index: 1, kind: output, shape index: {}]  }
   0x1   :  { %v2_v0 = vld [vmem:[%s24_s0] sm:$0x1] }
   0x2   :  { %v5_v1 = vxor.u32 2147483648, %v2_v0 }
   0x4   :  { %7 = vst [vmem:[%s25_s1] sm:$0x1] %v5_v1 }

// kernel: _forward_impl.1
= control target key start
LH: loop header
LB: loop body
LE: loop exit
PB: predicated region body
PF: predicated region fallthrough
CT: control target
= control target key end

     0   :  { %9 = vsyncpa [#allocation3], 0  ;;  %s2531_s0 = inlined_call_operand.vmem [shape: s32[4], index: 0, kind: input, shape index: {}]   ;;  %s2532_s1 = inlined_call_operand.vmem [shape: s32[128], index: 1, kind: input, shape index: {}]   ;;  %s2533_s2 = inlined_call_operand.vmem [shape: f32[768], index: 2, kind: input, shape index: {}]   ;;  %s2534_s3 = inlined_call_operand.vmem [shape: f32[32], index: 3, kind: input, shape index: {}]   ;;  %s2535_s4 = inlined_call_operand.vmem [shape: f32[8,64,128], index: 4, kind: output, shape index: {}]  }
   0x1   :  { %10 = vsyncpa [#allocation5], 0 }
   0x2   :  { %11 = vsyncpa [#allocation8], 0  ;;  %s1717_s15 = smov 0   ;;  %s1719_s16 = smov 0  }
   0x3   :  { %s1721_s17 = smov 0  }
   0x4 LB: > { %s1730_s18 = sadd.s32 4294967295, %s1569_s17   ;;  %s1732_s19 = sadd.s32 1, %s1569_s17   ;;  %s1569_s17 = sphi %s1721_s17, %s2567_s17   ;;  %s1565_s16 = sphi %s1719_s16, %s2566_s16   ;;  %s1561_s15 = sphi %s1717_s15, %s2565_s15  }
   0x5   : > { %s105_s20 = ssub.s32 %s1569_s17, %s1732_s19  ;;  %s108_s21 = sadd.s32 1, %s1565_s16 }
   0x6   : > { %p106_p0 = scmp.eq.s32.totalorder %s105_s20, 0  ;;  %p118_p1 = scmp.ne.s32.totalorder %s1565_s16, %s1561_s15 }
   0x7   : > { %p119_p2 = scmp.eq.s32.totalorder %s1730_s18, 3  ;;  %p991_p3 = scmp.ge.s32.totalorder %s1569_s17, 1 }
   0x8   : > { %s1740_s22 = scalar_select %p106_p0, %s1565_s16, %s108_s21  }
   0x9   : > { %p1742_p4 = por %p119_p2, %p118_p1  ;;  %p132_p5 = scmp.lt.s32.totalorder %s1569_s17, 5 }
   0xa   : > { %p1070_p6 = scmp.eq.s32.totalorder %s1730_s18, 0  ;;  %s154_s27 = sshll.u32 %s2532_s1, 4  ;;  %s155_s27 = int_to_ptr.vmem [resolvable:$true] %s154_s27 }
   0xb   : > { %p1747_p7 = pnand %p991_p3, %p132_p5  ;;  %s144_s30 = sshll.u32 %s2531_s0, 4  ;;  %s145_s30 = int_to_ptr.vmem [resolvable:$true] %s144_s30 }
   0xc   : > { %s164_s7 = sshll.u32 %s2533_s2, 4  ;;  %s174_s10 = sshll.u32 %s2534_s3, 4  ;;  %s165_s7 = int_to_ptr.vmem [resolvable:$true] %s164_s7  ;;  %s175_s10 = int_to_ptr.vmem [resolvable:$true] %s174_s10 }
   0xd   : > { %p1057_p8 = pneg %p1747_p7  ;;  %s1687_s11 = smov [#allocation4]  }
   0xe   : > { %s1688_s12 = smov [#allocation2]   ;;  %s1689_s13 = smov [#allocation6]  }
   0xf   : > { %p1058_p9 = pnand %p1070_p6, %p1057_p8  ;;  %s1690_s14 = smov [#allocation7]  }
  0x10   : > { %187 = sbr.rel (%p1747_p7) target bundleno = 219 (0xdb), region = 36 }
  0x11   : > { %1063 = dma.vmem_to_smem (!%p1058_p9), %s155_s27, 16, %s1687_s11, [#allocation5]  }
  0x12   : > { %1060 = dma.vmem_to_smem (!%p1058_p9), %s145_s30, 16, %s1688_s12, [#allocation3]  }
  0x13   : > { %1066 = dma.vmem_to_smem (!%p1058_p9), %s165_s7, 96, %s1689_s13, [#allocation5]  }
  0x14   : > { %1069 = dma.vmem_to_smem (!%p1058_p9), %s175_s10, 16, %s1690_s14, [#allocation8]  }
  0x15   : > { %1548 = dma.done.wait (%p1070_p6), [#allocation3], 16  }
  0x16   : > { %1550 = vsyncadd (%p1070_p6), [#allocation3], 4294967280 }
  0x17   : > { %1552 = dma.done.wait (%p1070_p6), [#allocation5], 112  }
  0x18   : > { %1554 = vsyncadd (%p1070_p6), [#allocation5], 4294967184 }
  0x19   : > { %1556 = dma.done.wait (%p1070_p6), [#allocation8], 16  }
  0x1a   : > { %1558 = vsyncadd (%p1070_p6), [#allocation8], 4294967280 }
  0x1b   : > { %209 = sfence }
  0x1c   : > { %s221_s17 = sand.u32 1, %s1561_s15   ;;  %s1002_s20 = sshll.u32 %s1730_s18, 4  ;;  %v227_v0 = vlaneseq  ;;  %v1798_v13 = vmov 0.0   ;;  %v1800_v14 = vmov 0.0   ;;  %v1802_v15 = vmov 0.0  }
  0x1d   : > { %s1001_s21 = sshll.u32 %s221_s17, 7  ;;  %s226_s24 = scvt.s32.f32 %s1002_s20  ;;  %v1804_v16 = vmov 0.0   ;;  %v1806_v17 = vmov 0.0   ;;  %v1808_v18 = vmov 0.0   ;;  %v1810_v19 = vmov 0.0  }
  0x1e   : > { %v228_v1 = vshrl.u32 %v227_v0, 7  ;;  %v238_v2 = vand.u32 127, %v227_v0  ;;  %s1786_s25 = sld [smem:[#allocation2 + %s1730_s18]]  ;;  %s1003_s26 = sshll.u32 %s1730_s18, 5  ;;  %v1812_v20 = vmov 0.0   ;;  %v1814_v21 = vmov 0.0  }
  0x1f   : > { %v232_v3 = vstv %s226_s24  ;;  %s1795_s15 = scalar_lea.vmem [#allocation9], %s1001_s21  ;;  %v1816_v22 = vmov 0.0   ;;  %v1818_v23 = vmov 0.0   ;;  %v1820_v24 = vmov 0.0  }
  0x20   : > { %v229_v4 = vadd.s32 8, %v228_v1  ;;  %v230_v5 = vcvt.s32.f32 %v228_v1  ;;  %v239_v6 = vcvt.s32.f32 %v238_v2  ;;  %v1822_v25 = vmov 1e+10  }
  0x21   : > { %v1824_v26 = vmov 1e+10  }
  0x22   : > { %v231_v7 = vcvt.s32.f32 %v229_v4  ;;  %v233_v8 = vadd.f32 %v232_v3, %v230_v5  ;;  %v1789_v9 = vadd.f32 0.5, %v239_v6 }
  0x24   : > { %v234_v10 = vadd.f32 %v232_v3, %v231_v7  ;;  %v1791_v11 = vadd.f32 0.5, %v233_v8  ;;  %p1004_p10 = scmp.le.s32.totalorder %s1786_s25, 0 }
  0x25   : > { %s1856_s27 = smov (!%p1004_p10), 0  }
  0x26   : > { %v1793_v12 = vadd.f32 0.5, %v234_v10  ;;  %908 = sbr.rel (%p1004_p10) target bundleno = 95 (0x5f), region = 119 }
  0x2b   : > { %v1828_v27 = vmov 0.0   ;;  %v1830_v28 = vmov 0.0   ;;  %v1832_v29 = vmov 0.0   ;;  %v1834_v30 = vmov 0.0  }
  0x2c   : > { %v1836_v31 = vmov 0.0   ;;  %v1838_v32 = vmov 0.0   ;;  %v1840_v33 = vmov 0.0   ;;  %v1842_v34 = vmov 0.0  }
  0x2d   : > { %v1844_v35 = vmov 0.0   ;;  %v1846_v36 = vmov 0.0   ;;  %v1848_v37 = vmov 0.0   ;;  %v1850_v38 = vmov 0.0  }
  0x2e   : > { %v1852_v39 = vmov 1e+10   ;;  %v1854_v40 = vmov 1e+10  }
  0x2f LB: >> { %s263_s28 = sadd.s32 %s1629_s27, %s1003_s26  ;;  %s246_s27 = sadd.s32 1, %s1629_s27   ;;  %s1629_s27 = sphi %s1856_s27, %s246_s27   ;;  %v1625_v40 = vphi %v1854_v40, %v2556_v40   ;;  %v1621_v39 = vphi %v1852_v39, %v2555_v39   ;;  %v1617_v38 = vphi %v1850_v38, %v2554_v38   ;;  %v1613_v37 = vphi %v1848_v37, %v2553_v37   ;;  %v1609_v36 = vphi %v1846_v36, %v2552_v36   ;;  %v1605_v35 = vphi %v1844_v35, %v2551_v35   ;;  %v1601_v34 = vphi %v1842_v34, %v2550_v34   ;;  %v1597_v33 = vphi %v1840_v33, %v2549_v33   ;;  %v1593_v32 = vphi %v1838_v32, %v2548_v32   ;;  %v1589_v31 = vphi %v1836_v31, %v2547_v31   ;;  %v1585_v30 = vphi %v1834_v30, %v2546_v30   ;;  %v1581_v29 = vphi %v1832_v29, %v2545_v29   ;;  %v1577_v28 = vphi %v1830_v28, %v2544_v28   ;;  %v1573_v27 = vphi %v1828_v27, %v2543_v27  }
  0x30   : >> { %s264_s29 = sld [smem:[#allocation4 + %s263_s28]]  ;;  %p2080_p11 = scmp.ge.s32.totalorder %s246_s27, %s1786_s25 }
  0x36   : >> { %s1906_s30 = smul.u32 24, %s264_s29 }
  0x38   : >> { %s266_s5 = sld [smem:[#allocation6 + %s1906_s30]]  ;;  %s267_s6 = sadd.s32 1, %s1906_s30 }
  0x39   : >> { %s268_s7 = sld [smem:[#allocation6 + %s267_s6]]  ;;  %s269_s8 = sadd.s32 2, %s1906_s30 }
  0x3a   : >> { %s1911_s9 = sld [smem:[#allocation6 + %s269_s8]]  ;;  %s271_s10 = sadd.s32 3, %s1906_s30 }
  0x3b   : >> { %s272_s11 = sld [smem:[#allocation6 + %s271_s10]]  ;;  %s273_s12 = sadd.s32 4, %s1906_s30 }
  0x3c   : >> { %s274_s13 = sld [smem:[#allocation6 + %s273_s12]]  ;;  %s275_s14 = sadd.s32 5, %s1906_s30 }
  0x3d   : >> { %s1916_s17 = sld [smem:[#allocation6 + %s275_s14]]  ;;  %s301_s21 = sadd.s32 8, %s1906_s30 }
  0x3e   : >> { %v277_v41 = vstv %s266_s5  ;;  %s1919_s24 = sld [smem:[#allocation6 + %s301_s21]]  ;;  %s303_s28 = sadd.s32 6, %s1906_s30 }
  0x3f   : >> { %v278_v42 = vmul.f32 %v277_v41, %v1789_v9  ;;  %v279_v43 = vstv %s268_s7  ;;  %s1923_s29 = sld [smem:[#allocation6 + %s303_s28]]  ;;  %s311_s6 = sadd.s32 7, %s1906_s30 }
  0x40   : >> { %v280_v44 = vmul.f32 %v279_v43, %v1791_v11  ;;  %v281_v45 = vmul.f32 %v279_v43, %v1793_v12  ;;  %s1928_s8 = sld [smem:[#allocation6 + %s311_s6]]  ;;  %s336_s10 = sadd.s32 14, %s1906_s30  ;;  %v284_v46 = vstv %s1911_s9 }
  0x41   : >> { %v287_v47 = vstv %s272_s11  ;;  %s1932_s5 = sld [smem:[#allocation6 + %s336_s10]]  ;;  %s338_s12 = sadd.s32 12, %s1906_s30 }
  0x42   : >> { %v282_v48 = vadd.f32 %v280_v44, %v278_v42  ;;  %v283_v49 = vadd.f32 %v281_v45, %v278_v42  ;;  %v288_v50 = vmul.f32 %v287_v47, %v1789_v9  ;;  %v289_v51 = vstv %s274_s13  ;;  %s1936_s7 = sld [smem:[#allocation6 + %s338_s12]]  ;;  %s346_s14 = sadd.s32 13, %s1906_s30 }
  0x43   : >> { %v290_v52 = vmul.f32 %v289_v51, %v1791_v11  ;;  %v291_v53 = vmul.f32 %v289_v51, %v1793_v12  ;;  %s1941_s9 = sld [smem:[#allocation6 + %s346_s14]]  ;;  %s353_s11 = sadd.s32 17, %s1906_s30  ;;  %v294_v56 = vstv %s1916_s17 }
  0x44   : >> { %v1944_v54 = vadd.f32 %v284_v46, %v282_v48  ;;  %v1946_v55 = vadd.f32 %v284_v46, %v283_v49  ;;  %s1949_s21 = sld [smem:[#allocation6 + %s353_s11]]  ;;  %s355_s13 = sadd.s32 15, %s1906_s30  ;;  %v308_v60 = vstv %s1919_s24 }
  0x45   : >> { %v292_v57 = vadd.f32 %v290_v52, %v288_v50  ;;  %v293_v58 = vadd.f32 %v291_v53, %v288_v50  ;;  %v305_v59 = vstv %s1923_s29  ;;  %s1954_s28 = sld [smem:[#allocation6 + %s355_s13]]  ;;  %s363_s6 = sadd.s32 16, %s1906_s30 }
  0x46   : >> { %v297_v61 = vsub.f32 1.0, %v1944_v54  ;;  %v298_v62 = vsub.f32 1.0, %v1946_v55  ;;  %v306_v63 = vmul.f32 %v305_v59, %v1944_v54  ;;  %v307_v0 = vmul.f32 %v305_v59, %v1946_v55  ;;  %s1961_s17 = sld [smem:[#allocation6 + %s363_s6]]  ;;  %s370_s10 = sadd.s32 20, %s1906_s30 }
  0x47   : >> { %v1964_v1 = vadd.f32 %v294_v56, %v292_v57  ;;  %v1966_v2 = vadd.f32 %v294_v56, %v293_v58  ;;  %v313_v3 = vstv %s1928_s8  ;;  %vm318_vm0 = vcmp.ge.f32.partialorder %v1944_v54, 0.0  ;;  %s1970_s24 = sld [smem:[#allocation6 + %s370_s10]]  ;;  %s372_s29 = sadd.s32 18, %s1906_s30 }
  0x48   : >> { %v309_v4 = vadd.f32 %v308_v60, %v306_v63  ;;  %v310_v5 = vadd.f32 %v308_v60, %v307_v0  ;;  %vm319_vm1 = vcmp.ge.f32.partialorder %v1946_v55, 0.0  ;;  %v340_v6 = vstv %s1936_s7  ;;  %s1975_s12 = sld [smem:[#allocation6 + %s372_s29]]  ;;  %s380_s14 = sadd.s32 19, %s1906_s30 }
  0x49   : >> { %v299_v7 = vsub.f32 %v297_v61, %v1964_v1  ;;  %v300_v8 = vsub.f32 %v298_v62, %v1966_v2  ;;  %v314_v10 = vmul.f32 %v313_v3, %v1964_v1  ;;  %v315_v13 = vmul.f32 %v313_v3, %v1966_v2  ;;  %s1982_s8 = sld [smem:[#allocation6 + %s380_s14]]  ;;  %s387_s11 = sadd.s32 9, %s1906_s30 }
  0x4a   : >> { %vm320_vm2 = vcmp.ge.f32.partialorder %v1964_v1, 0.0  ;;  %vm321_vm3 = vcmp.ge.f32.partialorder %v1966_v2, 0.0  ;;  %v341_v14 = vmul.f32 %v340_v6, %v1944_v54  ;;  %v342_v15 = vmul.f32 %v340_v6, %v1946_v55  ;;  %s1989_s7 = sld [smem:[#allocation6 + %s387_s11]]  ;;  %s389_s13 = sadd.s32 10, %s1906_s30 }
  0x4b   : >> { %v316_v16 = vadd.f32 %v314_v10, %v309_v4  ;;  %v317_v17 = vadd.f32 %v315_v13, %v310_v5  ;;  %vm322_vm4 = vmand %vm318_vm0, %vm320_vm2  ;;  %vm324_vm5 = vcmp.ge.f32.partialorder %v299_v7, 0.0  ;;  %vm325_vm6 = vcmp.ge.f32.partialorder %v300_v8, 0.0  ;;  %s391_s6 = sadd.s32 11, %s1906_s30  ;;  %s2001_s10 = sld [smem:[#allocation6 + %s389_s13]] }
  0x4c   : >> { %vm323_vm7 = vmand %vm319_vm1, %vm321_vm3  ;;  %v343_v18 = vstv %s1932_s5  ;;  %v348_v19 = vstv %s1941_s9  ;;  %v357_v20 = vstv %s1954_s28  ;;  %v360_v21 = vstv %s1949_s21  ;;  %s2005_s29 = sld [smem:[#allocation6 + %s391_s6]] }
  0x4d   : >> { %vm326_vm8 = vmand %vm322_vm4, %vm324_vm5  ;;  %vm328_vm9 = vcmp.gt.f32.partialorder %v316_v16, 0.001  ;;  %vm329_vm10 = vcmp.gt.f32.partialorder %v317_v17, 0.001  ;;  %vm332_vm11 = vcmp.lt.f32.partialorder %v316_v16, %v1625_v40  ;;  %vm333_vm12 = vcmp.lt.f32.partialorder %v317_v17, %v1621_v39 }
  0x4e   : >> { %vm327_vm13 = vmand %vm323_vm7, %vm325_vm6  ;;  %v344_v22 = vadd.f32 %v343_v18, %v341_v14  ;;  %v345_v23 = vadd.f32 %v343_v18, %v342_v15  ;;  %v349_v24 = vmul.f32 %v348_v19, %v1964_v1  ;;  %v350_v25 = vmul.f32 %v348_v19, %v1966_v2 }
  0x4f   : >> { %vm330_vm14 = vmand %vm326_vm8, %vm328_vm9  ;;  %v358_v26 = vmul.f32 %v357_v20, %v1944_v54  ;;  %v359_v41 = vmul.f32 %v357_v20, %v1946_v55  ;;  %v365_v42 = vstv %s1961_s17  ;;  %v374_v43 = vstv %s1975_s12 }
  0x50   : >> { %vm331_vm15 = vmand %vm327_vm13, %vm329_vm10  ;;  %v351_v44 = vadd.f32 %v349_v24, %v344_v22  ;;  %v352_v45 = vadd.f32 %v350_v25, %v345_v23  ;;  %v366_v46 = vmul.f32 %v365_v42, %v1964_v1  ;;  %v367_v47 = vmul.f32 %v365_v42, %v1966_v2 }
  0x51   : >> { %vm2017_vm0 = vmand %vm330_vm14, %vm332_vm11  ;;  %v361_v49 = vadd.f32 %v360_v21, %v358_v26  ;;  %v362_v50 = vadd.f32 %v360_v21, %v359_v41  ;;  %v375_v51 = vmul.f32 %v374_v43, %v1944_v54  ;;  %v376_v52 = vmul.f32 %v374_v43, %v1946_v55 }
  0x52   : >> { %vm2025_vm1 = vmand %vm331_vm15, %vm333_vm12  ;;  %v377_v56 = vstv %s1970_s24  ;;  %v382_v57 = vstv %s1982_s8  ;;  %v393_v58 = vsel %vm2017_vm0, %v316_v16, %v1625_v40   ;;  %v395_v59 = vstv %s1989_s7 }
  0x53   : >> { %v368_v60 = vadd.f32 %v366_v46, %v361_v49  ;;  %v369_v61 = vadd.f32 %v367_v47, %v362_v50  ;;  %v378_v54 = vadd.f32 %v377_v56, %v375_v51  ;;  %v379_v62 = vadd.f32 %v377_v56, %v376_v52 }
  0x54   : >> { %v383_v55 = vmul.f32 %v382_v57, %v1964_v1  ;;  %v384_v63 = vmul.f32 %v382_v57, %v1966_v2  ;;  %v394_v0 = vsel %vm2025_vm1, %v317_v17, %v1621_v39   ;;  %v396_v3 = vsel %vm2017_vm0, %v395_v59, %v1617_v38  }
  0x55   : >> { %v397_v4 = vsel %vm2025_vm1, %v395_v59, %v1613_v37   ;;  %v398_v40 = vstv %s2001_s10  ;;  %v401_v5 = vstv %s2005_s29  ;;  %v404_v1 = vsel %vm2017_vm0, %v351_v44, %v1593_v32  }
  0x56   : >> { %v385_v6 = vadd.f32 %v383_v55, %v378_v54  ;;  %v386_v2 = vadd.f32 %v384_v63, %v379_v62  ;;  %v399_v7 = vsel %vm2017_vm0, %v398_v40, %v1609_v36   ;;  %v400_v8 = vsel %vm2025_vm1, %v398_v40, %v1605_v35  }
  0x57   : >> { %v402_v10 = vsel %vm2017_vm0, %v401_v5, %v1601_v34   ;;  %v403_v19 = vsel %vm2025_vm1, %v401_v5, %v1597_v33   ;;  %v405_v17 = vsel %vm2025_vm1, %v352_v45, %v1589_v31   ;;  %v406_v16 = vsel %vm2017_vm0, %v368_v60, %v1585_v30  }
  0x58   : >> { %v407_v15 = vsel %vm2025_vm1, %v369_v61, %v1581_v29   ;;  %v408_v14 = vsel %vm2017_vm0, %v385_v6, %v1577_v28   ;;  %v409_v13 = vsel %vm2025_vm1, %v386_v2, %v1573_v27   ;;  %v2546_v30 = vmov %v406_v16  ;;  %248 = sbr.rel (!%p2080_p11) target bundleno = 47 (0x2f), region = 125 }
  0x59   : >> { %v2543_v27 = vmov %v409_v13  ;;  %v2544_v28 = vmov %v408_v14  ;;  %v2545_v29 = vmov %v407_v15  ;;  %v2547_v31 = vmov %v405_v17 }
  0x5a   : >> { %v2548_v32 = vmov %v404_v1  ;;  %v2549_v33 = vmov %v403_v19  ;;  %v2550_v34 = vmov %v402_v10  ;;  %v2551_v35 = vmov %v400_v8 }
  0x5b   : >> { %v2552_v36 = vmov %v399_v7  ;;  %v2553_v37 = vmov %v397_v4  ;;  %v2554_v38 = vmov %v396_v3  ;;  %v2555_v39 = vmov %v394_v0 }
  0x5c   : >> { %v2556_v40 = vmov %v393_v58  ;;  %v2557_v18 = vmov (%p2080_p11), %v404_v1  ;;  %v2558_v20 = vmov (%p2080_p11), %v402_v10  ;;  %v2559_v21 = vmov (%p2080_p11), %v400_v8 }
  0x5d   : > { %v2560_v22 = vmov %v399_v7  ;;  %v2561_v23 = vmov %v397_v4  ;;  %v2562_v24 = vmov %v396_v3  ;;  %v2563_v25 = vmov %v394_v0 }
  0x5e   : > { %v2564_v26 = vmov %v393_v58 }
  0x5f PF: > { %v505_v27 = vmul.f32 %v1677_v24, %v1677_v24  ;;  %v507_v28 = vmul.f32 %v1669_v22, %v1669_v22  ;;  %v511_v29 = vmul.f32 %v1661_v20, %v1661_v20  ;;  %s2192_s25 = sld [smem:[#allocation7]]  ;;  %v506_v33 = vmul.f32 %v1673_v23, %v1673_v23  ;;  %v1685_v26 = vphi %v1824_v26, %v2564_v26   ;;  %v1681_v25 = vphi %v1822_v25, %v2563_v25   ;;  %v1677_v24 = vphi %v1820_v24, %v2562_v24   ;;  %v1673_v23 = vphi %v1818_v23, %v2561_v23   ;;  %v1669_v22 = vphi %v1816_v22, %v2560_v22   ;;  %v1665_v21 = vphi %v1814_v21, %v2559_v21   ;;  %v1661_v20 = vphi %v1812_v20, %v2558_v20   ;;  %v1657_v19 = vphi %v1810_v19, %v403_v19   ;;  %v1653_v18 = vphi %v1808_v18, %v2557_v18   ;;  %v1649_v17 = vphi %v1806_v17, %v405_v17   ;;  %v1645_v16 = vphi %v1804_v16, %v406_v16   ;;  %v1641_v15 = vphi %v1802_v15, %v407_v15   ;;  %v1637_v14 = vphi %v1800_v14, %v408_v14   ;;  %v1633_v13 = vphi %v1798_v13, %v409_v13  }
  0x60   : > { %s2194_s26 = sld [smem:[#allocation7 + $0x1]]  ;;  %v508_v34 = vmul.f32 %v1665_v21, %v1665_v21  ;;  %vm439_vm2 = vcmp.lt.f32.partialorder %v1685_v26, 5e+09  ;;  %vm440_vm3 = vcmp.lt.f32.partialorder %v1681_v25, 5e+09  ;;  %v512_v36 = vmul.f32 %v1657_v19, %v1657_v19 }
  0x61   : > { %v509_v30 = vadd.f32 %v507_v28, %v505_v27  ;;  %s2196_s27 = sld [smem:[#allocation7 + $0x2]]  ;;  %v441_v38 = vsel %vm439_vm2, %v1685_v26, 1.0  ;;  %v2238_v42 = vsel %vm440_vm3, %v1681_v25, 1.0 }
  0x62   : > { %s2198_s5 = sld [smem:[#allocation7 + $0x3]]  ;;  %v510_v35 = vadd.f32 %v508_v34, %v506_v33 }
  0x63   : > { %v513_v31 = vadd.f32 %v511_v29, %v509_v30  ;;  %s2200_s9 = sld [smem:[#allocation7 + $0x4]] }
  0x64   : > { %s2204_s21 = sld [smem:[#allocation7 + $0x5]]  ;;  %v514_v46 = vadd.f32 %v512_v36, %v510_v35 }
  0x65   : > { %v2202_v32 = vadd.f32 1e-12, %v513_v31  ;;  %s2206_s28 = sld [smem:[#allocation7 + $0x10]]  ;;  %v543_v48 = vstv %s2192_s25 }
  0x66   : > { %s2208_s17 = sld [smem:[#allocation7 + $0x11]]  ;;  %v546_v49 = vstv %s2194_s26  ;;  %v2264_v61 = vadd.f32 1e-12, %v514_v46 }
  0x67   : > { %s1022_s24 = sld [smem:[#allocation7 + $0x12]]  ;;  %1339 = vrsqrt.f32 %v2202_v32  ;;  %v549_v53 = vstv %s2196_s27  ;;  %vm523_vm4 = vweird.f32 %v2202_v32 }
  0x68   : > { %s1023_s12 = sld [smem:[#allocation7 + $0x13]]  ;;  %1341 = vrsqrt.f32 %v2264_v61  ;;  %vm533_vm9 = vweird.f32 %v2264_v61 }
  0x69   : > { %s2215_s14 = sld [smem:[#allocation7 + $0x14]]  ;;  %v486_v7 = vstv %s2200_s9 }
  0x6a   : > { %s2217_s8 = sld [smem:[#allocation7 + $0x15]]  ;;  %v502_v34 = vstv %s2204_s21 }
  0x6b   : > { %s2223_s11 = sld [smem:[#allocation7 + $0x16]]  ;;  %v445_v41 = vstv %s2206_s28 }
  0x6c   : > { %s2225_s7 = sld [smem:[#allocation7 + $0x17]]  ;;  %v452_v45 = vstv %s2208_s17 }
  0x6d   : > { %v2227_v37 = vpop.eup %1339  ;;  %s2229_s13 = sld [smem:[#allocation7 + $0x18]]  ;;  %v443_v39 = vstv %s1022_s24 }
  0x6e   : > { %s2240_s6 = sld [smem:[#allocation7 + $0x19]]  ;;  %v444_v43 = vsub.f32 %v1789_v9, %v443_v39  ;;  %v449_v44 = vstv %s1023_s12  ;;  %v2253_v9 = vstv %s2198_s5  ;;  %v518_v52 = vmul.f32 %v2227_v37, %v2202_v32 }
  0x6f   : > { %s2244_s10 = sld [smem:[#allocation7 + $0x1a]]  ;;  %v450_v47 = vsub.f32 %v1791_v11, %v449_v44  ;;  %v451_v50 = vsub.f32 %v1793_v12, %v449_v44  ;;  %v457_v11 = vstv %s2215_s14  ;;  %vm524_vm5 = vweird.f32 %v2227_v37 }
  0x70   : > { %s2250_s29 = sld [smem:[#allocation7 + $0x1b]]  ;;  %v446_v51 = vmul.f32 %v445_v41, %v444_v43  ;;  %v460_v12 = vstv %s2217_s8  ;;  %v519_v35 = vmul.f32 %v2227_v37, %v518_v52  ;;  %vm525_vm6 = vmor %vm523_vm4, %vm524_vm5 }
  0x71   : > { %s2258_s30 = sld [smem:[#allocation7 + $0x1c]]  ;;  %v453_v56 = vmul.f32 %v452_v45, %v450_v47  ;;  %v465_v57 = vstv %s2223_s11  ;;  %v454_v58 = vmul.f32 %v452_v45, %v451_v50  ;;  %s2487_s11 = scalar_lea.vmem (%p1742_p4), %s2535_s4, %s1002_s20 }
  0x72   : > { %v447_v59 = vmul.f32 %v446_v51, %v441_v38  ;;  %v473_v60 = vstv %s2225_s7  ;;  %v466_v62 = vmul.f32 %v465_v57, %v441_v38  ;;  %v448_v63 = vmul.f32 %v446_v51, %v2238_v42  ;;  %s2399_s25 = sld [smem:[#allocation7 + $0x9]] }
  0x73   : > { %v455_v54 = vmul.f32 %v453_v56, %v441_v38  ;;  %v476_v55 = vstv %s2229_s13  ;;  %v456_v40 = vmul.f32 %v454_v58, %v2238_v42  ;;  %v467_v44 = vmul.f32 %v465_v57, %v2238_v42  ;;  %s2401_s26 = sld [smem:[#allocation7 + $0xf]] }
  0x74   : > { %v458_v0 = vmul.f32 %v457_v11, %v447_v59  ;;  %v474_v3 = vmul.f32 %v473_v60, %v447_v59  ;;  %v481_v4 = vstv %s2240_s6  ;;  %v459_v27 = vmul.f32 %v457_v11, %v448_v63  ;;  %s2403_s27 = sld [smem:[#allocation7 + $0xa]] }
  0x75   : > { %v461_v5 = vmul.f32 %v460_v12, %v455_v54  ;;  %v477_v1 = vmul.f32 %v476_v55, %v455_v54  ;;  %v482_v6 = vmul.f32 %v481_v4, %v441_v38  ;;  %v489_v2 = vstv %s2244_s10  ;;  %s2405_s5 = sld [smem:[#allocation7 + $0xb]] }
  0x76   : > { %v490_v8 = vmul.f32 %v489_v2, %v447_v59  ;;  %v492_v10 = vstv %s2250_s29  ;;  %v462_v43 = vmul.f32 %v460_v12, %v456_v40  ;;  %v475_v45 = vmul.f32 %v473_v60, %v448_v63  ;;  %s2407_s9 = sld [smem:[#allocation7 + $0x6]] }
  0x77   : > { %v463_v28 = vadd.f32 %v461_v5, %v458_v0  ;;  %v479_v29 = vadd.f32 %v477_v1, %v474_v3  ;;  %v493_v30 = vmul.f32 %v492_v10, %v455_v54  ;;  %v497_v31 = vstv %s2258_s30  ;;  %s2411_s21 = sld [smem:[#allocation7 + $0x7]] }
  0x78   : > { %v498_v33 = vmul.f32 %v497_v31, %v441_v38  ;;  %v478_v46 = vmul.f32 %v476_v55, %v456_v40  ;;  %v483_v47 = vmul.f32 %v481_v4, %v2238_v42  ;;  %v464_v52 = vadd.f32 %v462_v43, %v459_v27  ;;  %s2413_s28 = sld [smem:[#allocation7 + $0x8]] }
  0x79   : > { %v468_v36 = vadd.f32 %v466_v62, %v463_v28  ;;  %v484_v39 = vadd.f32 %v482_v6, %v479_v29  ;;  %v495_v41 = vadd.f32 %v493_v30, %v490_v8  ;;  %v491_v11 = vmul.f32 %v489_v2, %v448_v63  ;;  %v2292_v62 = vpop.eup %1341  ;;  %s2424_s17 = sld [smem:[#allocation7 + $0xc]] }
  0x7a   : > { %v480_v56 = vadd.f32 %v478_v46, %v475_v45  ;;  %v494_v58 = vmul.f32 %v492_v10, %v456_v40  ;;  %v499_v59 = vmul.f32 %v497_v31, %v2238_v42  ;;  %v469_v0 = vadd.f32 %v467_v44, %v464_v52  ;;  %s2432_s24 = sld [smem:[#allocation7 + $0xd]] }
  0x7b   : > { %v471_v50 = vadd.f32 %v2253_v9, %v468_v36  ;;  %v487_v38 = vadd.f32 %v486_v7, %v484_v39  ;;  %v500_v51 = vadd.f32 %v498_v33, %v495_v41  ;;  %v520_v41 = vmul.f32 0.5, %v519_v35  ;;  %s2438_s12 = sld [smem:[#allocation7 + $0xe]] }
  0x7c   : > { %v485_v3 = vadd.f32 %v483_v47, %v480_v56  ;;  %v496_v63 = vadd.f32 %v494_v58, %v491_v11  ;;  %v472_v2 = vadd.f32 %v2253_v9, %v469_v0  ;;  %vm534_vm10 = vweird.f32 %v2292_v62 }
  0x7d   : > { %v503_v54 = vadd.f32 %v502_v34, %v500_v51  ;;  %v2283_v12 = vsub.f32 %v543_v48, %v471_v50  ;;  %v2287_v57 = vsub.f32 %v546_v49, %v487_v38  ;;  %v2290_v60 = vsub.f32 %v2253_v9, %v471_v50  ;;  %vm535_vm13 = vmor %vm533_vm9, %vm534_vm10 }
  0x7e   : > { %v2294_v55 = vsub.f32 %v486_v7, %v487_v38  ;;  %v488_v8 = vadd.f32 %v486_v7, %v485_v3  ;;  %v501_v29 = vadd.f32 %v499_v59, %v496_v63  ;;  %v2317_v36 = vsub.f32 %v543_v48, %v472_v2 }
  0x7f   : > { %v2298_v42 = vsub.f32 %v549_v53, %v503_v54  ;;  %v552_v4 = vmul.f32 %v2283_v12, %v2283_v12  ;;  %v554_v40 = vmul.f32 %v2287_v57, %v2287_v57  ;;  %v2304_v5 = vsub.f32 %v502_v34, %v503_v54 }
  0x80   : > { %v596_v1 = vmul.f32 %v2290_v60, %v2290_v60  ;;  %v598_v6 = vmul.f32 %v2294_v55, %v2294_v55  ;;  %v504_v33 = vadd.f32 %v502_v34, %v501_v29  ;;  %v2321_v39 = vsub.f32 %v546_v49, %v488_v8 }
  0x81   : > { %v556_v10 = vadd.f32 %v554_v40, %v552_v4  ;;  %v558_v27 = vmul.f32 %v2298_v42, %v2298_v42  ;;  %v602_v28 = vmul.f32 %v2304_v5, %v2304_v5  ;;  %v2324_v44 = vsub.f32 %v2253_v9, %v472_v2 }
  0x82   : > { %v600_v30 = vadd.f32 %v598_v6, %v596_v1  ;;  %v2326_v45 = vsub.f32 %v486_v7, %v488_v8  ;;  %v2330_v47 = vsub.f32 %v549_v53, %v504_v33  ;;  %v553_v50 = vmul.f32 %v2317_v36, %v2317_v36 }
  0x83   : > { %v560_v31 = vadd.f32 %v558_v27, %v556_v10  ;;  %v555_v48 = vmul.f32 %v2321_v39, %v2321_v39  ;;  %v528_v49 = vmul.f32 %v2292_v62, %v2264_v61  ;;  %v2340_v35 = vsub.f32 %v502_v34, %v504_v33 }
  0x84   : > { %v604_v43 = vadd.f32 %v602_v28, %v600_v30  ;;  %v597_v9 = vmul.f32 %v2324_v44, %v2324_v44  ;;  %v559_v53 = vmul.f32 %v2330_v47, %v2330_v47  ;;  %v599_v51 = vmul.f32 %v2326_v45, %v2326_v45 }
  0x85   : > { %v562_v46 = vadd.f32 1e-12, %v560_v31  ;;  %v557_v7 = vadd.f32 %v555_v48, %v553_v50  ;;  %v521_v52 = vsub.f32 1.5, %v520_v41  ;;  %v603_v11 = vmul.f32 %v2340_v35, %v2340_v35 }
  0x86   : > { %v2336_v38 = vadd.f32 1e-12, %v604_v43  ;;  %v529_v34 = vmul.f32 %v2292_v62, %v528_v49  ;;  %v601_v58 = vadd.f32 %v599_v51, %v597_v9 }
  0x87   : > { %1343 = vrsqrt.f32 %v562_v46  ;;  %v561_v56 = vadd.f32 %v559_v53, %v557_v7  ;;  %v522_v3 = vmul.f32 %v2227_v37, %v521_v52  ;;  %vm570_vm7 = vweird.f32 %v562_v46 }
  0x88   : > { %1345 = vrsqrt.f32 %v2336_v38  ;;  %v605_v54 = vadd.f32 %v603_v11, %v601_v58  ;;  %v530_v40 = vmul.f32 0.5, %v529_v34  ;;  %vm614_vm12 = vweird.f32 %v2336_v38 }
  0x89   : > { %v563_v59 = vadd.f32 1e-12, %v561_v56  ;;  %v526_v32 = vsel %vm525_vm6, %v2227_v37, %v522_v3 }
  0x8a   : > { %v2355_v1 = vadd.f32 1e-12, %v605_v54  ;;  %v531_v27 = vsub.f32 1.5, %v530_v40  ;;  %v537_v33 = vmul.f32 %v1677_v24, %v526_v32  ;;  %v541_v49 = vmul.f32 %v1661_v20, %v526_v32 }
  0x8b   : > { %1347 = vrsqrt.f32 %v563_v59  ;;  %vm580_vm14 = vweird.f32 %v563_v59 }
  0x8c   : > { %1349 = vrsqrt.f32 %v2355_v1  ;;  %v532_v37 = vmul.f32 %v2292_v62, %v531_v27  ;;  %vm624_vm5 = vweird.f32 %v2355_v1 }
  0x8d   : > { %v1344_v0 = vpop.eup %1343 }
  0x8e   : > { %v1346_v63 = vpop.eup %1345  ;;  %v565_v4 = vmul.f32 %v1344_v0, %v562_v46  ;;  %vm571_vm8 = vweird.f32 %v1344_v0  ;;  %v539_v46 = vmul.f32 %v1669_v22, %v526_v32  ;;  %v536_v22 = vsel %vm535_vm13, %v2292_v62, %v532_v37 }
  0x8f   : > { %v609_v6 = vmul.f32 %v1346_v63, %v2336_v38  ;;  %vm572_vm11 = vmor %vm570_vm7, %vm571_vm8  ;;  %vm615_vm0 = vweird.f32 %v1346_v63 }
  0x90   : > { %v566_v2 = vmul.f32 %v1344_v0, %v565_v4  ;;  %vm616_vm4 = vmor %vm614_vm12, %vm615_vm0 }
  0x91   : > { %v610_v8 = vmul.f32 %v1346_v63, %v609_v6  ;;  %v1348_v28 = vpop.eup %1347  ;;  %v542_v6 = vmul.f32 %v1657_v19, %v536_v22 }
  0x92   : > { %v567_v10 = vmul.f32 0.5, %v566_v2  ;;  %v575_v31 = vmul.f32 %v1348_v28, %v563_v59  ;;  %v1350_v41 = vpop.eup %1349  ;;  %vm581_vm15 = vweird.f32 %v1348_v28 }
  0x93   : > { %v611_v29 = vmul.f32 0.5, %v610_v8  ;;  %v619_v61 = vmul.f32 %v1350_v41, %v2355_v1  ;;  %vm582_vm1 = vmor %vm580_vm14, %vm581_vm15  ;;  %vm625_vm6 = vweird.f32 %v1350_v41 }
  0x94   : > { %v568_v30 = vsub.f32 1.5, %v567_v10  ;;  %v576_v48 = vmul.f32 %v1348_v28, %v575_v31  ;;  %vm626_vm7 = vmor %vm624_vm5, %vm625_vm6 }
  0x95   : > { %v612_v50 = vsub.f32 1.5, %v611_v29  ;;  %v620_v58 = vmul.f32 %v1350_v41, %v619_v61 }
  0x96   : > { %v569_v43 = vmul.f32 %v1344_v0, %v568_v30  ;;  %v577_v7 = vmul.f32 0.5, %v576_v48 }
  0x97   : > { %v613_v52 = vmul.f32 %v1346_v63, %v612_v50 }
  0x98   : > { %v573_v9 = vsel %vm572_vm11, %v1344_v0, %v569_v43  ;;  %v578_v20 = vsub.f32 1.5, %v577_v7 }
  0x99   : > { %v584_v24 = vmul.f32 %v573_v9, %v2283_v12  ;;  %v586_v53 = vmul.f32 %v573_v9, %v2287_v57  ;;  %v588_v51 = vmul.f32 %v573_v9, %v2298_v42  ;;  %v621_v12 = vmul.f32 0.5, %v620_v58 }
  0x9a   : > { %v579_v59 = vmul.f32 %v1348_v28, %v578_v20  ;;  %v538_v57 = vmul.f32 %v1673_v23, %v536_v22  ;;  %v540_v42 = vmul.f32 %v1665_v21, %v536_v22  ;;  %v617_v3 = vsel %vm616_vm4, %v1346_v63, %v613_v52 }
  0x9b   : > { %v634_v56 = vmul.f32 %v584_v24, %v537_v33  ;;  %v636_v11 = vmul.f32 %v586_v53, %v539_v46  ;;  %v640_v34 = vmul.f32 %v588_v51, %v541_v49  ;;  %v622_v2 = vsub.f32 1.5, %v621_v12 }
  0x9c   : > { %v583_v0 = vsel %vm582_vm1, %v1348_v28, %v579_v59  ;;  %v628_v21 = vmul.f32 %v617_v3, %v2290_v60  ;;  %v630_v23 = vmul.f32 %v617_v3, %v2294_v55  ;;  %v684_v59 = vstv %s2401_s26 }
  0x9d   : > { %v638_v54 = vadd.f32 %v636_v11, %v634_v56  ;;  %v585_v62 = vmul.f32 %v583_v0, %v2317_v36  ;;  %v587_v40 = vmul.f32 %v583_v0, %v2321_v39  ;;  %v589_v38 = vmul.f32 %v583_v0, %v2330_v47 }
  0x9e   : > { %v632_v36 = vmul.f32 %v617_v3, %v2304_v5  ;;  %v623_v19 = vmul.f32 %v1350_v41, %v622_v2  ;;  %v1691_v56 = vmov 0.0   ;;  %v706_v0 = vstv %s2403_s27 }
  0x9f   : > { %v2376_v4 = vadd.f32 %v640_v34, %v638_v54  ;;  %v635_v63 = vmul.f32 %v585_v62, %v538_v57  ;;  %v637_v8 = vmul.f32 %v587_v40, %v540_v42  ;;  %v641_v47 = vmul.f32 %v589_v38, %v542_v6  ;;  %754 = vst [vmem:[%s1795_s15 + $0x50] sm:$0xff] %v1691_v56 }
  0xa0   : > { %v627_v50 = vsel %vm626_vm7, %v1350_v41, %v623_v19  ;;  %v1033_v11 = vsel %vm439_vm2, 1.0, %v1691_v56  ;;  %755 = vst [vmem:[%s1795_s15 + $0x58] sm:$0xff] %v1691_v56  ;;  %v719_v3 = vstv %s2405_s5 }
  0xa1   : > { %v646_v32 = vmul.f32 2.0, %v2376_v4  ;;  %v639_v28 = vadd.f32 %v637_v8, %v635_v63  ;;  %v633_v61 = vmul.f32 %v627_v50, %v2340_v35  ;;  %750 = vst [vmem:[%s1795_s15 + $0x30] sm:$0xff] %v1033_v11  ;;  %v644_v54 = vmax.f32 %v2376_v4, 0.0 }
  0xa2   : > { %756 = vst [vmem:[%s1795_s15 + $0x60] sm:$0xff] %v1691_v56  ;;  %v696_v63 = vstv %s2407_s9  ;;  %v709_v8 = vstv %s2411_s21  ;;  %vm672_vm8 = vcmp.gt.f32.partialorder %v2376_v4, 0.0 }
  0xa3   : > { %v648_v10 = vmul.f32 %v646_v32, %v537_v33  ;;  %v652_v39 = vmul.f32 %v646_v32, %v539_v46  ;;  %v656_v27 = vmul.f32 %v646_v32, %v541_v49  ;;  %v2390_v37 = vadd.f32 %v641_v47, %v639_v28  ;;  %757 = vst [vmem:[%s1795_s15 + $0x68] sm:$0xff] %v1691_v56 }
  0xa4   : > { %v629_v46 = vmul.f32 %v627_v50, %v2324_v44  ;;  %v631_v49 = vmul.f32 %v627_v50, %v2326_v45  ;;  %758 = vst [vmem:[%s1795_s15 + $0x70] sm:$0xff] %v1691_v56 }
  0xa5   : > { %v650_v29 = vsub.f32 %v648_v10, %v584_v24  ;;  %v654_v30 = vsub.f32 %v652_v39, %v586_v53  ;;  %v658_v31 = vsub.f32 %v656_v27, %v588_v51  ;;  %v647_v33 = vmul.f32 2.0, %v2390_v37  ;;  %759 = vst [vmem:[%s1795_s15 + $0x78] sm:$0xff] %v1691_v56 }
  0xa6   : > { %v645_v27 = vmax.f32 %v2390_v37, 0.0  ;;  %vm673_vm11 = vcmp.gt.f32.partialorder %v2390_v37, 0.0 }
  0xa7   : > { %v660_v60 = vmul.f32 %v650_v29, %v628_v21  ;;  %v662_v43 = vmul.f32 %v654_v30, %v630_v23  ;;  %v666_v55 = vmul.f32 %v658_v31, %v632_v36  ;;  %v649_v9 = vmul.f32 %v647_v33, %v538_v57 }
  0xa8   : > { %v653_v1 = vmul.f32 %v647_v33, %v540_v42  ;;  %v657_v7 = vmul.f32 %v647_v33, %v542_v6  ;;  %v693_v42 = vstv %s2399_s25  ;;  %v742_v6 = vsel %vm439_vm2, %v1685_v26, -1.0 }
  0xa9   : > { %v664_v5 = vadd.f32 %v662_v43, %v660_v60  ;;  %v651_v41 = vsub.f32 %v649_v9, %v585_v62  ;;  %v1034_v62 = vsel %vm440_vm3, 1.0, %v1691_v56  ;;  %v694_v32 = vmul.f32 %v693_v42, %v644_v54  ;;  %752 = vst [vmem:[%s1795_s15 + $0x40] sm:$0xff] %v742_v6  ;;  %v848_v6 = vld [vmem:[%s1795_s15 + $0x50] sm:$0xff] (%p1742_p4) }
  0xaa   : > { %v655_v53 = vsub.f32 %v653_v1, %v587_v40  ;;  %v659_v51 = vsub.f32 %v657_v7, %v589_v38  ;;  %v743_v38 = vsel %vm440_vm3, %v1681_v25, -1.0  ;;  %v707_v21 = vmul.f32 %v706_v0, %v644_v54  ;;  %751 = vst [vmem:[%s1795_s15 + $0x38] sm:$0xff] %v1034_v62 }
  0xab   : > { %v2393_v48 = vadd.f32 %v666_v55, %v664_v5  ;;  %v661_v44 = vmul.f32 %v651_v41, %v629_v46  ;;  %v720_v23 = vmul.f32 %v719_v3, %v644_v54  ;;  %v722_v36 = vstv %s2413_s28  ;;  %753 = vst [vmem:[%s1795_s15 + $0x48] sm:$0xff] %v743_v38  ;;  %v850_v38 = vld [vmem:[%s1795_s15 + $0x58] sm:$0xff] (%p1742_p4) }
  0xac   : > { %v663_v22 = vmul.f32 %v655_v53, %v631_v49  ;;  %v667_v45 = vmul.f32 %v659_v51, %v633_v61  ;;  %v697_v39 = vadd.f32 %v696_v63, %v694_v32  ;;  %v710_v19 = vadd.f32 %v709_v8, %v707_v21  ;;  %849 = vst [vmem:[%s2487_s11 + $0x140] sm:$0xff] (%p1742_p4), %v848_v6  ;;  %v854_v32 = vld [vmem:[%s1795_s15 + $0x68] sm:$0xff] (%p1742_p4)  ;;  %v856_v21 = vld [vmem:[%s1795_s15 + $0x70] sm:$0xff] (%p1742_p4) }
  0xad   : > { %v670_v24 = vmax.f32 %v2393_v48, 0.0  ;;  %v723_v28 = vadd.f32 %v722_v36, %v720_v23  ;;  %v701_v29 = vstv %s2424_s17  ;;  %v714_v31 = vstv %s2432_s24  ;;  %851 = vst [vmem:[%s2487_s11 + $0x148] sm:$0xff] (%p1742_p4), %v850_v38  ;;  %v858_v23 = vld [vmem:[%s1795_s15 + $0x78] sm:$0xff] (%p1742_p4) }
  0xae   : > { %v665_v35 = vadd.f32 %v663_v22, %v661_v44  ;;  %v727_v60 = vstv %s2438_s12  ;;  %v699_v55 = vmul.f32 %v1653_v18, %v697_v39  ;;  %v695_v50 = vmul.f32 %v693_v42, %v645_v27  ;;  %855 = vst [vmem:[%s2487_s11 + $0x188] sm:$0xff] (%p1742_p4), %v854_v32 }
  0xaf   : > { %v678_v52 = vmax.f32 %v670_v24, 1e-12  ;;  %vm674_vm9 = vcmp.gt.f32.partialorder %v670_v24, 0.0  ;;  %v712_v5 = vmul.f32 %v1645_v16, %v710_v19  ;;  %v725_v4 = vmul.f32 %v1637_v14, %v723_v28  ;;  %857 = vst [vmem:[%s2487_s11 + $0x1c0] sm:$0xff] (%p1742_p4), %v856_v21 }
  0xb0   : > { %v2409_v20 = vadd.f32 %v667_v45, %v665_v35  ;;  %vm676_vm10 = vmand %vm672_vm8, %vm674_vm9  ;;  %v708_v46 = vmul.f32 %v706_v0, %v645_v27  ;;  %v721_v49 = vmul.f32 %v719_v3, %v645_v27  ;;  %v698_v16 = vadd.f32 %v696_v63, %v695_v50  ;;  %v840_v0 = vld [vmem:[%s1795_s15 + $0x30] sm:$0xff] (%p1742_p4)  ;;  %v844_v62 = vld [vmem:[%s1795_s15 + $0x40] sm:$0xff] (%p1742_p4)  ;;  %859 = vst [vmem:[%s2487_s11 + $0x1c8] sm:$0xff] (%p1742_p4), %v858_v23 }
  0xb1   : > { %1351 = vlog2.f32 %v678_v52  ;;  %v842_v3 = vld [vmem:[%s1795_s15 + $0x38] sm:$0xff] (%p1742_p4)  ;;  %841 = vst [vmem:[%s2487_s11 + $0xc0] sm:$0xff] (%p1742_p4), %v840_v0 }
  0xb2   : > { %v671_v34 = vmax.f32 %v2409_v20, 0.0  ;;  %v711_v41 = vadd.f32 %v709_v8, %v708_v46  ;;  %v724_v14 = vadd.f32 %v722_v36, %v721_v49  ;;  %v700_v44 = vmul.f32 %v1649_v17, %v698_v16  ;;  %843 = vst [vmem:[%s2487_s11 + $0xc8] sm:$0xff] (%p1742_p4), %v842_v3 }
  0xb3   : > { %845 = vst [vmem:[%s2487_s11 + $0x100] sm:$0xff] (%p1742_p4), %v844_v62 }
  0xb4   : > { %v679_v57 = vmax.f32 %v671_v34, 1e-12  ;;  %vm675_vm12 = vcmp.gt.f32.partialorder %v671_v34, 0.0  ;;  %v713_v22 = vmul.f32 %v1641_v15, %v711_v41  ;;  %v726_v45 = vmul.f32 %v1633_v13, %v724_v14 }
  0xb5   : > { %vm677_vm13 = vmand %vm673_vm11, %vm675_vm12 }
  0xb6   : > { %1353 = vlog2.f32 %v679_v57 }
  0xb7   : > { %v1352_v58 = vpop.eup %1351 }
  0xb8   : > { %v681_v12 = vmul.f32 0.6931472, %v1352_v58 }
  0xba   : > { %v685_v40 = vmul.f32 %v684_v59, %v681_v12 }
  0xbc   : > { %v687_v2 = vmul.f32 1.442695, %v685_v40  ;;  %v1354_v10 = vpop.eup %1353  ;;  %v846_v40 = vld [vmem:[%s1795_s15 + $0x48] sm:$0xff] (%p1742_p4) }
  0xbd   : > { %v683_v47 = vmul.f32 0.6931472, %v1354_v10  ;;  %847 = vst [vmem:[%s2487_s11 + $0x108] sm:$0xff] (%p1742_p4), %v846_v40 }
  0xbe   : > { %1355 = vpow2.f32 %v687_v2  ;;  %v852_v2 = vld [vmem:[%s1795_s15 + $0x60] sm:$0xff] (%p1742_p4) }
  0xbf   : > { %v686_v30 = vmul.f32 %v684_v59, %v683_v47  ;;  %853 = vst [vmem:[%s2487_s11 + $0x180] sm:$0xff] (%p1742_p4), %v852_v2 }
  0xc1   : > { %v689_v48 = vmul.f32 1.442695, %v686_v30 }
  0xc3   : > { %1357 = vpow2.f32 %v689_v48 }
  0xc4   : > { %v1356_v43 = vpop.eup %1355 }
  0xc5   : > { %v691_v33 = vsel %vm676_vm10, %v1356_v43, 0.0 }
  0xc6   : > { %v702_v61 = vmul.f32 %v701_v29, %v691_v33  ;;  %v715_v9 = vmul.f32 %v714_v31, %v691_v33  ;;  %v728_v1 = vmul.f32 %v727_v60, %v691_v33 }
  0xc8   : > { %v704_v7 = vadd.f32 %v702_v61, %v699_v55  ;;  %v717_v18 = vadd.f32 %v715_v9, %v712_v5  ;;  %v730_v24 = vadd.f32 %v728_v1, %v725_v4 }
  0xc9   : > { %v1358_v37 = vpop.eup %1357 }
  0xca   : > { %v736_v53 = vsel %vm439_vm2, %v704_v7, 0.0  ;;  %v738_v51 = vsel %vm439_vm2, %v717_v18, 0.0  ;;  %v740_v52 = vsel %vm439_vm2, %v730_v24, 0.0  ;;  %v692_v35 = vsel %vm677_vm13, %v1358_v37, 0.0 }
  0xcb   : > { %744 = vst [vmem:[%s1795_s15] sm:$0xff] %v736_v53  ;;  %v703_v20 = vmul.f32 %v701_v29, %v692_v35  ;;  %v716_v56 = vmul.f32 %v714_v31, %v692_v35  ;;  %v729_v11 = vmul.f32 %v727_v60, %v692_v35 }
  0xcc   : > { %746 = vst [vmem:[%s1795_s15 + $0x10] sm:$0xff] %v738_v51 }
  0xcd   : > { %748 = vst [vmem:[%s1795_s15 + $0x20] sm:$0xff] %v740_v52  ;;  %v705_v26 = vadd.f32 %v703_v20, %v700_v44  ;;  %v718_v34 = vadd.f32 %v716_v56, %v713_v22  ;;  %v731_v58 = vadd.f32 %v729_v11, %v726_v45 }
  0xce   : > { %766 = sbr.rel (!%p1742_p4) target bundleno = 219 (0xdb), region = 63 }
  0xcf   : > { %v737_v59 = vsel %vm440_vm3, %v705_v26, 0.0  ;;  %v739_v54 = vsel %vm440_vm3, %v718_v34, 0.0  ;;  %v741_v17 = vsel %vm440_vm3, %v731_v58, 0.0 }
  0xd0   : > { %745 = vst [vmem:[%s1795_s15 + $0x8] sm:$0xff] %v737_v59 }
  0xd1   : > { %747 = vst [vmem:[%s1795_s15 + $0x18] sm:$0xff] %v739_v54 }
  0xd2   : > { %749 = vst [vmem:[%s1795_s15 + $0x28] sm:$0xff] %v741_v17  ;;  %v828_v25 = vld [vmem:[%s1795_s15] sm:$0xff] (%p1742_p4) }
  0xd3   : > { %v832_v13 = vld [vmem:[%s1795_s15 + $0x10] sm:$0xff]  ;;  %829 = vst [vmem:[%s2487_s11] sm:$0xff] %v828_v25 }
  0xd4   : > { %v836_v57 = vld [vmem:[%s1795_s15 + $0x20] sm:$0xff]  ;;  %833 = vst [vmem:[%s2487_s11 + $0x40] sm:$0xff] %v832_v13 }
  0xd5   : > { %837 = vst [vmem:[%s2487_s11 + $0x80] sm:$0xff] %v836_v57 }
  0xd7   : > { %v830_v15 = vld [vmem:[%s1795_s15 + $0x8] sm:$0xff] }
  0xd8   : > { %v834_v12 = vld [vmem:[%s1795_s15 + $0x18] sm:$0xff]  ;;  %831 = vst [vmem:[%s2487_s11 + $0x8] sm:$0xff] %v830_v15 }
  0xd9   : > { %v838_v42 = vld [vmem:[%s1795_s15 + $0x28] sm:$0xff]  ;;  %835 = vst [vmem:[%s2487_s11 + $0x48] sm:$0xff] %v834_v12 }
  0xda   : > { %839 = vst [vmem:[%s2487_s11 + $0x88] sm:$0xff] %v838_v42 }
  0xdb PF: > { %p14_p12 = scmp.ge.s32.totalorder %s1732_s19, 6   ;;  %s2565_s15 = smov %s1565_s16 }
  0xdc   : > { %s2566_s16 = smov %s1740_s22  ;;  %s2567_s17 = smov %s1732_s19 }
  0xdd   :  { %16 = sbr.rel (!%p14_p12) target bundleno = 4 (0x4), region = 136 }
  0xe2   :  { %875 = vsyncpa [#allocation3], 1 }
  0xe3   :  { %877 = vsyncpa [#allocation3 + $0x1], 1 }
  0xe4   :  { %878 = vsyncpa [#allocation5], 1 }
  0xe5   :  { %879 = vsyncpa [#allocation8], 1 }

</bundles_post_ra>
